<compile_context>
chip_gen: v7x
topology: tpu7x:2x2x1
jax: 0.10.0
libtpu: 0.0.40
codegen_flags: <defaults>
</compile_context>

<pallas_src>
import numpy as np
import jax
import jax.numpy as jnp
from jax.experimental import pallas as pl
from jax.experimental.pallas import tpu as pltpu

EPS = 1e-5  # nn.InstanceNorm2d default eps


# ---------------------------------------------------------------------------
# Fused Pallas kernel: conv1+SiLU+IN -> conv2+SiLU+IN -> bilinear upsample
# ---------------------------------------------------------------------------
def upblock_kernel(x_ref, m1_ref, b1_ref, m2_ref, b2_ref,
                   s_ref, p1_ref, p2_ref, ah_ref, bw_ref, o_ref):
    x = x_ref[0]                                             # (H, W*Ci)  f32

    def conv_silu_inorm(inp, m_ref, b_ref, p_ref):
        # 3x3 reflect-pad conv:  out = sum_kh  S[kh] @ (inp @ M[kh])
        inp_b = inp.astype(jnp.bfloat16)                     # bf16 MXU operands
        n_out = m_ref.shape[-1]
        acc = jnp.zeros((inp.shape[0], n_out), jnp.float32)
        for kh in range(3):                                  # static unroll
            t = jnp.dot(inp_b, m_ref[kh].astype(jnp.bfloat16),
                        preferred_element_type=jnp.float32)  # (H, W*Co)
            acc = acc + jnp.dot(s_ref[kh], t,
                                preferred_element_type=jnp.float32)
        y = acc + b_ref[...]                                 # bias (1, W*Co)
        y = y / (1.0 + jnp.exp(-y))                          # SiLU, f32
        # InstanceNorm (affine=False), single-pass stats.  The channel-pooling
        # matrix P both reduces over W and broadcasts back (already / (H*W)).
        mean = jnp.sum(jnp.dot(y, p_ref[...], preferred_element_type=jnp.float32),
                       axis=0, keepdims=True)                # (1, W*Co)
        ey2 = jnp.sum(jnp.dot(y * y, p_ref[...], preferred_element_type=jnp.float32),
                      axis=0, keepdims=True)
        var = ey2 - mean * mean                              # biased variance
        return (y - mean) * jax.lax.rsqrt(var + EPS)

    y1 = conv_silu_inorm(x, m1_ref, b1_ref, p1_ref)          # (H, W*Hc)
    y2 = conv_silu_inorm(y1, m2_ref, b2_ref, p2_ref)         # (H, W*Co)

    # Bilinear upsample (align_corners=True), separable, as a matmul epilogue:
    #   out = A_h @ (y2 @ B_w),  B_w = kron(A_w^T, I_Co)  (channel-interleaved)
    u = jnp.dot(y2, bw_ref[...], preferred_element_type=jnp.float32)   # (H, Wo*Co)
    o_ref[0] = jnp.dot(ah_ref[...], u,
                       preferred_element_type=jnp.float32).astype(o_ref.dtype)


def _upblock_pallas(x2d, prep):
    B, H, WCi = x2d.shape
    m1, b1, m2, b2 = prep["m1"], prep["b1"], prep["m2"], prep["b2"]
    s, p1, p2, ah, bw = prep["s"], prep["p1"], prep["p2"], prep["ah"], prep["bw"]
    WHc = m1.shape[-1]
    WCo = m2.shape[-1]
    Ho = ah.shape[0]
    WoCo = bw.shape[-1]
    return pl.pallas_call(
        upblock_kernel,
        out_shape=jax.ShapeDtypeStruct((B, Ho, WoCo), jnp.float32),
        grid=(B,),
        in_specs=[
            pl.BlockSpec((1, H, WCi), lambda b: (b, 0, 0)),    # x, row-folded NHWC
            pl.BlockSpec((3, WCi, WHc), lambda b: (0, 0, 0)),  # M1 (Toeplitz conv1)
            pl.BlockSpec((1, WHc), lambda b: (0, 0)),          # bias1 (tiled over W)
            pl.BlockSpec((3, WHc, WCo), lambda b: (0, 0, 0)),  # M2 (Toeplitz conv2)
            pl.BlockSpec((1, WCo), lambda b: (0, 0)),          # bias2
            pl.BlockSpec((3, H, H), lambda b: (0, 0, 0)),      # S (row reflect-shift)
            pl.BlockSpec((WHc, WHc), lambda b: (0, 0)),        # P1 (channel pool / HW)
            pl.BlockSpec((WCo, WCo), lambda b: (0, 0)),        # P2
            pl.BlockSpec((Ho, H), lambda b: (0, 0)),           # A_h (H interpolation)
            pl.BlockSpec((WCo, WoCo), lambda b: (0, 0)),       # B_w = kron(A_w^T, I)
        ],
        out_specs=pl.BlockSpec((1, Ho, WoCo), lambda b: (b, 0, 0)),
        compiler_params=pltpu.CompilerParams(dimension_semantics=("parallel",)),
    )(x2d, m1, b1, m2, b2, s, p1, p2, ah, bw)


# ---------------------------------------------------------------------------
# One-time (hoisted) constant construction
# ---------------------------------------------------------------------------
def bilinear_matrix(n_in, n_out):
    """Interpolation matrix of nn.UpsamplingBilinear2d (align_corners=True)."""
    A = np.zeros((n_out, n_in), dtype=np.float32)
    scale = (n_in - 1) / (n_out - 1) if n_out > 1 else 0.0
    for i in range(n_out):
        s = i * scale
        i0 = int(np.floor(s))
        i1 = min(i0 + 1, n_in - 1)
        w1 = s - i0
        A[i, i0] += 1.0 - w1
        A[i, i1] += w1
    return A


def _reflect(i, n):
    if i < 0:
        return -i
    if i >= n:
        return 2 * n - 2 - i
    return i


def conv_to_row_toeplitz(w_oihw, W):
    """(Co,Ci,3,3) conv weight -> M[kh] of shape (W*Ci, W*Co), with the W-direction
    reflect padding folded in.  Acts on row-folded rows (lane index = w*Ci + ci)."""
    w = np.asarray(w_oihw, dtype=np.float32)
    Co, Ci = w.shape[0], w.shape[1]
    M = np.zeros((3, W * Ci, W * Co), dtype=np.float32)
    for kh in range(3):
        for wo in range(W):
            for kw in range(3):
                wi = _reflect(wo + kw - 1, W)
                M[kh, wi * Ci:(wi + 1) * Ci, wo * Co:(wo + 1) * Co] += w[:, :, kh, kw].T
    return M


def row_reflect_shift(H):
    """S[kh] (H,H) 0/1 matrices with (S[kh] @ x)[h] = x[reflect(h + kh - 1)]."""
    S = np.zeros((3, H, H), dtype=np.float32)
    for kh in range(3):
        for h in range(H):
            S[kh, h, _reflect(h + kh - 1, H)] = 1.0
    return S


def prepare_upblock(params, H, W, downscale=2):
    """Build all constant matrices once (hoisted out of the per-call path)."""
    w1 = np.asarray(params["w1"], np.float32)
    b1 = np.asarray(params["b1"], np.float32)
    w2 = np.asarray(params["w2"], np.float32)
    b2 = np.asarray(params["b2"], np.float32)
    Hc, Co = w1.shape[0], w2.shape[0]
    Ho, Wo = H * downscale, W * downscale
    A_h = bilinear_matrix(H, Ho)
    A_w = bilinear_matrix(W, Wo)
    hw = float(H * W)
    return dict(
        m1=jnp.asarray(conv_to_row_toeplitz(w1, W)),
        b1=jnp.asarray(np.tile(b1, W)[None, :]),
        m2=jnp.asarray(conv_to_row_toeplitz(w2, W)),
        b2=jnp.asarray(np.tile(b2, W)[None, :]),
        s=jnp.asarray(row_reflect_shift(H)),
        p1=jnp.asarray(np.kron(np.ones((W, W), np.float32),
                               np.eye(Hc, dtype=np.float32)) / hw),
        p2=jnp.asarray(np.kron(np.ones((W, W), np.float32),
                               np.eye(Co, dtype=np.float32)) / hw),
        ah=jnp.asarray(A_h),
        bw=jnp.asarray(np.kron(A_w.T, np.eye(Co, dtype=np.float32))),
        co=Co, ho=Ho, wo=Wo,
    )


# ---------------------------------------------------------------------------
# Module-facing forward (NCHW in / NCHW out); only layout plumbing in XLA
# ---------------------------------------------------------------------------
def upblock_forward(x, x_skip, prep):
    B, _, H, W = x.shape
    xcat = jnp.concatenate([x_skip, x], axis=1)                  # (B, 2*in_c, H, W)
    ci = xcat.shape[1]
    # row-folded NHWC: lane index = w*Ci + ci  (lane-dense, W*Ci wide)
    x2d = jnp.transpose(xcat, (0, 2, 3, 1)).reshape(B, H, W * ci)
    out2d = _upblock_pallas(x2d, prep)                           # (B, Ho, Wo*Co)
    co, Ho, Wo = prep["co"], prep["ho"], prep["wo"]
    return out2d.reshape(B, Ho, Wo, co).transpose(0, 3, 1, 2)    # NCHW


# ---------------------------------------------------------------------------
# Pure-JAX reference (mirrors the PyTorch ops, all f32)
# ---------------------------------------------------------------------------
def upblock_reference(x, x_skip, params, downscale=2):
    xcat = jnp.concatenate([x_skip, x], axis=1)

    def conv(xin, w, b):
        xp = jnp.pad(xin, ((0, 0), (0, 0), (1, 1), (1, 1)), mode="reflect")
        y = jax.lax.conv_general_dilated(
            xp, w, (1, 1), "VALID", dimension_numbers=("NCHW", "OIHW", "NCHW"))
        return y + b[None, :, None, None]

    def silu(t):
        return t * jax.nn.sigmoid(t)

    def inorm(t):
        m = t.mean(axis=(2, 3), keepdims=True)
        v = ((t - m) ** 2).mean(axis=(2, 3), keepdims=True)
        return (t - m) * jax.lax.rsqrt(v + EPS)

    h = inorm(silu(conv(xcat, params["w1"], params["b1"])))
    h = inorm(silu(conv(h, params["w2"], params["b2"])))
    H, W = h.shape[2], h.shape[3]
    A_h = jnp.asarray(bilinear_matrix(H, H * downscale))
    A_w = jnp.asarray(bilinear_matrix(W, W * downscale))
    return jnp.einsum("oh,pw,nchw->ncop", A_h, A_w, h)


# ---------------------------------------------------------------------------
if __name__ == "__main__":
    B, in_c, out_c, H, W = 2, 4, 8, 16, 16
    downscale = 2

    key = jax.random.PRNGKey(0)
    k_x, k_s, k_w1, k_b1, k_w2, k_b2 = jax.random.split(key, 6)

    # Pre-round inputs/weights to bf16-representable f32 so the in-kernel bf16
    # MXU casts of the *inputs and weights* are exact; only the stage-2
    # intermediate activations incur bf16 rounding inside the kernel.
    def bf16_exact(a):
        return a.astype(jnp.bfloat16).astype(jnp.float32)

    x = bf16_exact(jax.random.normal(k_x, (B, in_c, H, W), dtype=jnp.float32))
    x_skip = bf16_exact(jax.random.normal(k_s, (B, in_c, H, W), dtype=jnp.float32))

    # BasicBlock(in_c*2, out_c): conv1 (out_c, 2*in_c, 3, 3), conv2 (out_c, out_c, 3, 3)
    params = {
        "w1": bf16_exact(jax.random.normal(k_w1, (out_c, 2 * in_c, 3, 3), jnp.float32) * 0.2),
        "b1": bf16_exact(jax.random.normal(k_b1, (out_c,), jnp.float32) * 0.1),
        "w2": bf16_exact(jax.random.normal(k_w2, (out_c, out_c, 3, 3), jnp.float32) * 0.2),
        "b2": bf16_exact(jax.random.normal(k_b2, (out_c,), jnp.float32) * 0.1),
    }

    prep = prepare_upblock(params, H, W, downscale)          # built once (hoisted)
    fwd = jax.jit(lambda a, b: upblock_forward(a, b, prep))

    out = jax.block_until_ready(fwd(x, x_skip))
    ref = jax.block_until_ready(upblock_reference(x, x_skip, params, downscale))

    assert out.shape == (B, out_c, H * downscale, W * downscale), out.shape
    err = float(jnp.max(jnp.abs(out - ref)))
    # bf16 MXU operands (per perf review): the only precision difference vs the
    # f32 reference is the in-kernel bf16 rounding of stage-2 activations, which
    # lands around the 1e-2 level.
    assert err < 5e-2, f"max abs error too large: {err}"

    print("KERNEL_OK")
</pallas_src>

<mosaic_0001>
module attributes {stable_mosaic.version = 11 : i64} {
  func.func @upblock_kernel(%arg0: i32, %arg1: memref<1x16x128xf32, #tpu.memory_space<vmem>>, %arg2: memref<3x128x128xf32, #tpu.memory_space<vmem>>, %arg3: memref<1x128xf32, #tpu.memory_space<vmem>>, %arg4: memref<3x128x128xf32, #tpu.memory_space<vmem>>, %arg5: memref<1x128xf32, #tpu.memory_space<vmem>>, %arg6: memref<3x16x16xf32, #tpu.memory_space<vmem>>, %arg7: memref<128x128xf32, #tpu.memory_space<vmem>>, %arg8: memref<128x128xf32, #tpu.memory_space<vmem>>, %arg9: memref<32x16xf32, #tpu.memory_space<vmem>>, %arg10: memref<128x256xf32, #tpu.memory_space<vmem>>, %arg11: memref<1x32x256xf32, #tpu.memory_space<vmem>>) attributes {dimension_semantics = [#tpu.dimension_semantics<parallel>], iteration_bounds = array<i64: 2>, scalar_prefetch = 0 : i64, scratch_operands = 0 : i64, tpu.core_type = #tpu.core_type<tc>, window_params = [{transform_indices = @transform_0, window_bounds = array<i64: 1, 16, 128>}, {pipeline_mode = #tpu.pipeline_mode<synchronous>, transform_indices = @transform_1, window_bounds = array<i64: 3, 128, 128>}, {pipeline_mode = #tpu.pipeline_mode<synchronous>, transform_indices = @transform_2, window_bounds = array<i64: 1, 128>}, {pipeline_mode = #tpu.pipeline_mode<synchronous>, transform_indices = @transform_3, window_bounds = array<i64: 3, 128, 128>}, {pipeline_mode = #tpu.pipeline_mode<synchronous>, transform_indices = @transform_4, window_bounds = array<i64: 1, 128>}, {pipeline_mode = #tpu.pipeline_mode<synchronous>, transform_indices = @transform_5, window_bounds = array<i64: 3, 16, 16>}, {pipeline_mode = #tpu.pipeline_mode<synchronous>, transform_indices = @transform_6, window_bounds = array<i64: 128, 128>}, {pipeline_mode = #tpu.pipeline_mode<synchronous>, transform_indices = @transform_7, window_bounds = array<i64: 128, 128>}, {pipeline_mode = #tpu.pipeline_mode<synchronous>, transform_indices = @transform_8, window_bounds = array<i64: 32, 16>}, {pipeline_mode = #tpu.pipeline_mode<synchronous>, transform_indices = @transform_9, window_bounds = array<i64: 128, 256>}, {transform_indices = @transform_10, window_bounds = array<i64: 1, 32, 256>}]} {
    %c0 = arith.constant 0 : index
    %c0_0 = arith.constant 0 : index
    %c0_1 = arith.constant 0 : index
    %0 = vector.load %arg1[%c0, %c0_0, %c0_1] : memref<1x16x128xf32, #tpu.memory_space<vmem>>, vector<1x16x128xf32>
    %1 = vector.shape_cast %0 : vector<1x16x128xf32> to vector<16x128xf32>
    %2 = arith.truncf %1 : vector<16x128xf32> to vector<16x128xbf16>
    %cst = arith.constant 0.000000e+00 : f32
    %3 = vector.broadcast %cst : f32 to vector<16x128xf32>
    %c0_2 = arith.constant 0 : index
    %c0_3 = arith.constant 0 : index
    %c0_4 = arith.constant 0 : index
    %4 = vector.load %arg2[%c0_2, %c0_3, %c0_4] : memref<3x128x128xf32, #tpu.memory_space<vmem>>, vector<1x128x128xf32>
    %5 = vector.shape_cast %4 : vector<1x128x128xf32> to vector<128x128xf32>
    %6 = arith.truncf %5 : vector<128x128xf32> to vector<128x128xbf16>
    %cst_5 = arith.constant dense<0.000000e+00> : vector<16x128xf32>
    %7 = tpu.matmul %2, %6, %cst_5 {dimension_numbers = #tpu.dot_dimension_numbers<[1], [0], [0], [1], [0, 0, 1, 1], [], []>} : vector<16x128xbf16>, vector<128x128xbf16>, vector<16x128xf32> -> vector<16x128xf32>
    %c0_6 = arith.constant 0 : index
    %c0_7 = arith.constant 0 : index
    %c0_8 = arith.constant 0 : index
    %8 = vector.load %arg6[%c0_6, %c0_7, %c0_8] : memref<3x16x16xf32, #tpu.memory_space<vmem>>, vector<1x16x16xf32>
    %9 = vector.shape_cast %8 : vector<1x16x16xf32> to vector<16x16xf32>
    %cst_9 = arith.constant dense<0.000000e+00> : vector<16x128xf32>
    %10 = tpu.matmul %9, %7, %cst_9 {dimension_numbers = #tpu.dot_dimension_numbers<[1], [0], [0], [1], [0, 0, 1, 1], [], []>} : vector<16x16xf32>, vector<16x128xf32>, vector<16x128xf32> -> vector<16x128xf32>
    %11 = arith.addf %3, %10 : vector<16x128xf32>
    %c1 = arith.constant 1 : index
    %c0_10 = arith.constant 0 : index
    %c0_11 = arith.constant 0 : index
    %12 = vector.load %arg2[%c1, %c0_10, %c0_11] : memref<3x128x128xf32, #tpu.memory_space<vmem>>, vector<1x128x128xf32>
    %13 = vector.shape_cast %12 : vector<1x128x128xf32> to vector<128x128xf32>
    %14 = arith.truncf %13 : vector<128x128xf32> to vector<128x128xbf16>
    %cst_12 = arith.constant dense<0.000000e+00> : vector<16x128xf32>
    %15 = tpu.matmul %2, %14, %cst_12 {dimension_numbers = #tpu.dot_dimension_numbers<[1], [0], [0], [1], [0, 0, 1, 1], [], []>} : vector<16x128xbf16>, vector<128x128xbf16>, vector<16x128xf32> -> vector<16x128xf32>
    %c1_13 = arith.constant 1 : index
    %c0_14 = arith.constant 0 : index
    %c0_15 = arith.constant 0 : index
    %16 = vector.load %arg6[%c1_13, %c0_14, %c0_15] : memref<3x16x16xf32, #tpu.memory_space<vmem>>, vector<1x16x16xf32>
    %17 = vector.shape_cast %16 : vector<1x16x16xf32> to vector<16x16xf32>
    %cst_16 = arith.constant dense<0.000000e+00> : vector<16x128xf32>
    %18 = tpu.matmul %17, %15, %cst_16 {dimension_numbers = #tpu.dot_dimension_numbers<[1], [0], [0], [1], [0, 0, 1, 1], [], []>} : vector<16x16xf32>, vector<16x128xf32>, vector<16x128xf32> -> vector<16x128xf32>
    %19 = arith.addf %11, %18 : vector<16x128xf32>
    %c2 = arith.constant 2 : index
    %c0_17 = arith.constant 0 : index
    %c0_18 = arith.constant 0 : index
    %20 = vector.load %arg2[%c2, %c0_17, %c0_18] : memref<3x128x128xf32, #tpu.memory_space<vmem>>, vector<1x128x128xf32>
    %21 = vector.shape_cast %20 : vector<1x128x128xf32> to vector<128x128xf32>
    %22 = arith.truncf %21 : vector<128x128xf32> to vector<128x128xbf16>
    %cst_19 = arith.constant dense<0.000000e+00> : vector<16x128xf32>
    %23 = tpu.matmul %2, %22, %cst_19 {dimension_numbers = #tpu.dot_dimension_numbers<[1], [0], [0], [1], [0, 0, 1, 1], [], []>} : vector<16x128xbf16>, vector<128x128xbf16>, vector<16x128xf32> -> vector<16x128xf32>
    %c2_20 = arith.constant 2 : index
    %c0_21 = arith.constant 0 : index
    %c0_22 = arith.constant 0 : index
    %24 = vector.load %arg6[%c2_20, %c0_21, %c0_22] : memref<3x16x16xf32, #tpu.memory_space<vmem>>, vector<1x16x16xf32>
    %25 = vector.shape_cast %24 : vector<1x16x16xf32> to vector<16x16xf32>
    %cst_23 = arith.constant dense<0.000000e+00> : vector<16x128xf32>
    %26 = tpu.matmul %25, %23, %cst_23 {dimension_numbers = #tpu.dot_dimension_numbers<[1], [0], [0], [1], [0, 0, 1, 1], [], []>} : vector<16x16xf32>, vector<16x128xf32>, vector<16x128xf32> -> vector<16x128xf32>
    %27 = arith.addf %19, %26 : vector<16x128xf32>
    %c0_24 = arith.constant 0 : index
    %c0_25 = arith.constant 0 : index
    %28 = vector.load %arg3[%c0_24, %c0_25] : memref<1x128xf32, #tpu.memory_space<vmem>>, vector<1x128xf32>
    %29 = vector.broadcast %28 : vector<1x128xf32> to vector<16x128xf32>
    %30 = arith.addf %27, %29 : vector<16x128xf32>
    %cst_26 = arith.constant 0.000000e+00 : f32
    %31 = vector.broadcast %cst_26 : f32 to vector<16x128xf32>
    %32 = arith.subf %31, %30 : vector<16x128xf32>
    %33 = math.exp %32 : vector<16x128xf32>
    %cst_27 = arith.constant 1.000000e+00 : f32
    %34 = vector.broadcast %cst_27 : f32 to vector<16x128xf32>
    %35 = arith.addf %34, %33 : vector<16x128xf32>
    %36 = arith.divf %30, %35 : vector<16x128xf32>
    %c0_28 = arith.constant 0 : index
    %c0_29 = arith.constant 0 : index
    %37 = vector.load %arg7[%c0_28, %c0_29] : memref<128x128xf32, #tpu.memory_space<vmem>>, vector<128x128xf32>
    %cst_30 = arith.constant dense<0.000000e+00> : vector<16x128xf32>
    %38 = tpu.matmul %36, %37, %cst_30 {dimension_numbers = #tpu.dot_dimension_numbers<[1], [0], [0], [1], [0, 0, 1, 1], [], []>} : vector<16x128xf32>, vector<128x128xf32>, vector<16x128xf32> -> vector<16x128xf32>
    %cst_31 = arith.constant dense<0.000000e+00> : vector<128xf32>
    %39 = vector.multi_reduction <add>, %38, %cst_31 [0] : vector<16x128xf32> to vector<128xf32>
    %40 = vector.shape_cast %39 : vector<128xf32> to vector<1x128xf32>
    %41 = arith.mulf %36, %36 : vector<16x128xf32>
    %c0_32 = arith.constant 0 : index
    %c0_33 = arith.constant 0 : index
    %42 = vector.load %arg7[%c0_32, %c0_33] : memref<128x128xf32, #tpu.memory_space<vmem>>, vector<128x128xf32>
    %cst_34 = arith.constant dense<0.000000e+00> : vector<16x128xf32>
    %43 = tpu.matmul %41, %42, %cst_34 {dimension_numbers = #tpu.dot_dimension_numbers<[1], [0], [0], [1], [0, 0, 1, 1], [], []>} : vector<16x128xf32>, vector<128x128xf32>, vector<16x128xf32> -> vector<16x128xf32>
    %cst_35 = arith.constant dense<0.000000e+00> : vector<128xf32>
    %44 = vector.multi_reduction <add>, %43, %cst_35 [0] : vector<16x128xf32> to vector<128xf32>
    %45 = vector.shape_cast %44 : vector<128xf32> to vector<1x128xf32>
    %46 = arith.mulf %40, %40 : vector<1x128xf32>
    %47 = arith.subf %45, %46 : vector<1x128xf32>
    %48 = vector.broadcast %40 : vector<1x128xf32> to vector<16x128xf32>
    %49 = arith.subf %36, %48 : vector<16x128xf32>
    %cst_36 = arith.constant 9.99999974E-6 : f32
    %50 = vector.broadcast %cst_36 : f32 to vector<1x128xf32>
    %51 = arith.addf %47, %50 : vector<1x128xf32>
    %52 = math.rsqrt %51 : vector<1x128xf32>
    %53 = vector.broadcast %52 : vector<1x128xf32> to vector<16x128xf32>
    %54 = arith.mulf %49, %53 : vector<16x128xf32>
    %55 = arith.truncf %54 : vector<16x128xf32> to vector<16x128xbf16>
    %cst_37 = arith.constant 0.000000e+00 : f32
    %56 = vector.broadcast %cst_37 : f32 to vector<16x128xf32>
    %c0_38 = arith.constant 0 : index
    %c0_39 = arith.constant 0 : index
    %c0_40 = arith.constant 0 : index
    %57 = vector.load %arg4[%c0_38, %c0_39, %c0_40] : memref<3x128x128xf32, #tpu.memory_space<vmem>>, vector<1x128x128xf32>
    %58 = vector.shape_cast %57 : vector<1x128x128xf32> to vector<128x128xf32>
    %59 = arith.truncf %58 : vector<128x128xf32> to vector<128x128xbf16>
    %cst_41 = arith.constant dense<0.000000e+00> : vector<16x128xf32>
    %60 = tpu.matmul %55, %59, %cst_41 {dimension_numbers = #tpu.dot_dimension_numbers<[1], [0], [0], [1], [0, 0, 1, 1], [], []>} : vector<16x128xbf16>, vector<128x128xbf16>, vector<16x128xf32> -> vector<16x128xf32>
    %c0_42 = arith.constant 0 : index
    %c0_43 = arith.constant 0 : index
    %c0_44 = arith.constant 0 : index
    %61 = vector.load %arg6[%c0_42, %c0_43, %c0_44] : memref<3x16x16xf32, #tpu.memory_space<vmem>>, vector<1x16x16xf32>
    %62 = vector.shape_cast %61 : vector<1x16x16xf32> to vector<16x16xf32>
    %cst_45 = arith.constant dense<0.000000e+00> : vector<16x128xf32>
    %63 = tpu.matmul %62, %60, %cst_45 {dimension_numbers = #tpu.dot_dimension_numbers<[1], [0], [0], [1], [0, 0, 1, 1], [], []>} : vector<16x16xf32>, vector<16x128xf32>, vector<16x128xf32> -> vector<16x128xf32>
    %64 = arith.addf %56, %63 : vector<16x128xf32>
    %c1_46 = arith.constant 1 : index
    %c0_47 = arith.constant 0 : index
    %c0_48 = arith.constant 0 : index
    %65 = vector.load %arg4[%c1_46, %c0_47, %c0_48] : memref<3x128x128xf32, #tpu.memory_space<vmem>>, vector<1x128x128xf32>
    %66 = vector.shape_cast %65 : vector<1x128x128xf32> to vector<128x128xf32>
    %67 = arith.truncf %66 : vector<128x128xf32> to vector<128x128xbf16>
    %cst_49 = arith.constant dense<0.000000e+00> : vector<16x128xf32>
    %68 = tpu.matmul %55, %67, %cst_49 {dimension_numbers = #tpu.dot_dimension_numbers<[1], [0], [0], [1], [0, 0, 1, 1], [], []>} : vector<16x128xbf16>, vector<128x128xbf16>, vector<16x128xf32> -> vector<16x128xf32>
    %c1_50 = arith.constant 1 : index
    %c0_51 = arith.constant 0 : index
    %c0_52 = arith.constant 0 : index
    %69 = vector.load %arg6[%c1_50, %c0_51, %c0_52] : memref<3x16x16xf32, #tpu.memory_space<vmem>>, vector<1x16x16xf32>
    %70 = vector.shape_cast %69 : vector<1x16x16xf32> to vector<16x16xf32>
    %cst_53 = arith.constant dense<0.000000e+00> : vector<16x128xf32>
    %71 = tpu.matmul %70, %68, %cst_53 {dimension_numbers = #tpu.dot_dimension_numbers<[1], [0], [0], [1], [0, 0, 1, 1], [], []>} : vector<16x16xf32>, vector<16x128xf32>, vector<16x128xf32> -> vector<16x128xf32>
    %72 = arith.addf %64, %71 : vector<16x128xf32>
    %c2_54 = arith.constant 2 : index
    %c0_55 = arith.constant 0 : index
    %c0_56 = arith.constant 0 : index
    %73 = vector.load %arg4[%c2_54, %c0_55, %c0_56] : memref<3x128x128xf32, #tpu.memory_space<vmem>>, vector<1x128x128xf32>
    %74 = vector.shape_cast %73 : vector<1x128x128xf32> to vector<128x128xf32>
    %75 = arith.truncf %74 : vector<128x128xf32> to vector<128x128xbf16>
    %cst_57 = arith.constant dense<0.000000e+00> : vector<16x128xf32>
    %76 = tpu.matmul %55, %75, %cst_57 {dimension_numbers = #tpu.dot_dimension_numbers<[1], [0], [0], [1], [0, 0, 1, 1], [], []>} : vector<16x128xbf16>, vector<128x128xbf16>, vector<16x128xf32> -> vector<16x128xf32>
    %c2_58 = arith.constant 2 : index
    %c0_59 = arith.constant 0 : index
    %c0_60 = arith.constant 0 : index
    %77 = vector.load %arg6[%c2_58, %c0_59, %c0_60] : memref<3x16x16xf32, #tpu.memory_space<vmem>>, vector<1x16x16xf32>
    %78 = vector.shape_cast %77 : vector<1x16x16xf32> to vector<16x16xf32>
    %cst_61 = arith.constant dense<0.000000e+00> : vector<16x128xf32>
    %79 = tpu.matmul %78, %76, %cst_61 {dimension_numbers = #tpu.dot_dimension_numbers<[1], [0], [0], [1], [0, 0, 1, 1], [], []>} : vector<16x16xf32>, vector<16x128xf32>, vector<16x128xf32> -> vector<16x128xf32>
    %80 = arith.addf %72, %79 : vector<16x128xf32>
    %c0_62 = arith.constant 0 : index
    %c0_63 = arith.constant 0 : index
    %81 = vector.load %arg5[%c0_62, %c0_63] : memref<1x128xf32, #tpu.memory_space<vmem>>, vector<1x128xf32>
    %82 = vector.broadcast %81 : vector<1x128xf32> to vector<16x128xf32>
    %83 = arith.addf %80, %82 : vector<16x128xf32>
    %cst_64 = arith.constant 0.000000e+00 : f32
    %84 = vector.broadcast %cst_64 : f32 to vector<16x128xf32>
    %85 = arith.subf %84, %83 : vector<16x128xf32>
    %86 = math.exp %85 : vector<16x128xf32>
    %cst_65 = arith.constant 1.000000e+00 : f32
    %87 = vector.broadcast %cst_65 : f32 to vector<16x128xf32>
    %88 = arith.addf %87, %86 : vector<16x128xf32>
    %89 = arith.divf %83, %88 : vector<16x128xf32>
    %c0_66 = arith.constant 0 : index
    %c0_67 = arith.constant 0 : index
    %90 = vector.load %arg8[%c0_66, %c0_67] : memref<128x128xf32, #tpu.memory_space<vmem>>, vector<128x128xf32>
    %cst_68 = arith.constant dense<0.000000e+00> : vector<16x128xf32>
    %91 = tpu.matmul %89, %90, %cst_68 {dimension_numbers = #tpu.dot_dimension_numbers<[1], [0], [0], [1], [0, 0, 1, 1], [], []>} : vector<16x128xf32>, vector<128x128xf32>, vector<16x128xf32> -> vector<16x128xf32>
    %cst_69 = arith.constant dense<0.000000e+00> : vector<128xf32>
    %92 = vector.multi_reduction <add>, %91, %cst_69 [0] : vector<16x128xf32> to vector<128xf32>
    %93 = vector.shape_cast %92 : vector<128xf32> to vector<1x128xf32>
    %94 = arith.mulf %89, %89 : vector<16x128xf32>
    %c0_70 = arith.constant 0 : index
    %c0_71 = arith.constant 0 : index
    %95 = vector.load %arg8[%c0_70, %c0_71] : memref<128x128xf32, #tpu.memory_space<vmem>>, vector<128x128xf32>
    %cst_72 = arith.constant dense<0.000000e+00> : vector<16x128xf32>
    %96 = tpu.matmul %94, %95, %cst_72 {dimension_numbers = #tpu.dot_dimension_numbers<[1], [0], [0], [1], [0, 0, 1, 1], [], []>} : vector<16x128xf32>, vector<128x128xf32>, vector<16x128xf32> -> vector<16x128xf32>
    %cst_73 = arith.constant dense<0.000000e+00> : vector<128xf32>
    %97 = vector.multi_reduction <add>, %96, %cst_73 [0] : vector<16x128xf32> to vector<128xf32>
    %98 = vector.shape_cast %97 : vector<128xf32> to vector<1x128xf32>
    %99 = arith.mulf %93, %93 : vector<1x128xf32>
    %100 = arith.subf %98, %99 : vector<1x128xf32>
    %101 = vector.broadcast %93 : vector<1x128xf32> to vector<16x128xf32>
    %102 = arith.subf %89, %101 : vector<16x128xf32>
    %cst_74 = arith.constant 9.99999974E-6 : f32
    %103 = vector.broadcast %cst_74 : f32 to vector<1x128xf32>
    %104 = arith.addf %100, %103 : vector<1x128xf32>
    %105 = math.rsqrt %104 : vector<1x128xf32>
    %106 = vector.broadcast %105 : vector<1x128xf32> to vector<16x128xf32>
    %107 = arith.mulf %102, %106 : vector<16x128xf32>
    %c0_75 = arith.constant 0 : index
    %c0_76 = arith.constant 0 : index
    %108 = vector.load %arg10[%c0_75, %c0_76] : memref<128x256xf32, #tpu.memory_space<vmem>>, vector<128x256xf32>
    %cst_77 = arith.constant dense<0.000000e+00> : vector<16x256xf32>
    %109 = tpu.matmul %107, %108, %cst_77 {dimension_numbers = #tpu.dot_dimension_numbers<[1], [0], [0], [1], [0, 0, 1, 1], [], []>} : vector<16x128xf32>, vector<128x256xf32>, vector<16x256xf32> -> vector<16x256xf32>
    %c0_78 = arith.constant 0 : index
    %c0_79 = arith.constant 0 : index
    %110 = vector.load %arg9[%c0_78, %c0_79] : memref<32x16xf32, #tpu.memory_space<vmem>>, vector<32x16xf32>
    %cst_80 = arith.constant dense<0.000000e+00> : vector<32x256xf32>
    %111 = tpu.matmul %110, %109, %cst_80 {dimension_numbers = #tpu.dot_dimension_numbers<[1], [0], [0], [1], [0, 0, 1, 1], [], []>} : vector<32x16xf32>, vector<16x256xf32>, vector<32x256xf32> -> vector<32x256xf32>
    %c0_81 = arith.constant 0 : index
    %c0_82 = arith.constant 0 : index
    %c0_83 = arith.constant 0 : index
    %112 = vector.load %arg11[%c0_81, %c0_82, %c0_83] : memref<1x32x256xf32, #tpu.memory_space<vmem>>, vector<1x32x256xf32>
    %113 = vector.shape_cast %112 : vector<1x32x256xf32> to vector<32x256xf32>
    %114 = vector.shape_cast %111 : vector<32x256xf32> to vector<1x32x256xf32>
    tpu.vector_store %arg11[%c0_81, %c0_82, %c0_83], %114 {strides = array<i32>} : memref<1x32x256xf32, #tpu.memory_space<vmem>>, vector<1x32x256xf32>,
    return
  }
  func.func @transform_0(%arg0: i32) -> (i32, i32, i32) {
    %c0_i32 = arith.constant 0 : i32
    %c0_i32_0 = arith.constant 0 : i32
    %c0_i32_1 = arith.constant 0 : i32
    return %arg0, %c0_i32, %c0_i32_0 : i32, i32, i32
  }
  func.func @transform_1(%arg0: i32) -> (i32, i32, i32) {
    %c0_i32 = arith.constant 0 : i32
    %c0_i32_0 = arith.constant 0 : i32
    %c0_i32_1 = arith.constant 0 : i32
    %c0_i32_2 = arith.constant 0 : i32
    return %c0_i32, %c0_i32_0, %c0_i32_1 : i32, i32, i32
  }
  func.func @transform_2(%arg0: i32) -> (i32, i32) {
    %c0_i32 = arith.constant 0 : i32
    %c0_i32_0 = arith.constant 0 : i32
    %c0_i32_1 = arith.constant 0 : i32
    return %c0_i32, %c0_i32_0 : i32, i32
  }
  func.func @transform_3(%arg0: i32) -> (i32, i32, i32) {
    %c0_i32 = arith.constant 0 : i32
    %c0_i32_0 = arith.constant 0 : i32
    %c0_i32_1 = arith.constant 0 : i32
    %c0_i32_2 = arith.constant 0 : i32
    return %c0_i32, %c0_i32_0, %c0_i32_1 : i32, i32, i32
  }
  func.func @transform_4(%arg0: i32) -> (i32, i32) {
    %c0_i32 = arith.constant 0 : i32
    %c0_i32_0 = arith.constant 0 : i32
    %c0_i32_1 = arith.constant 0 : i32
    return %c0_i32, %c0_i32_0 : i32, i32
  }
  func.func @transform_5(%arg0: i32) -> (i32, i32, i32) {
    %c0_i32 = arith.constant 0 : i32
    %c0_i32_0 = arith.constant 0 : i32
    %c0_i32_1 = arith.constant 0 : i32
    %c0_i32_2 = arith.constant 0 : i32
    return %c0_i32, %c0_i32_0, %c0_i32_1 : i32, i32, i32
  }
  func.func @transform_6(%arg0: i32) -> (i32, i32) {
    %c0_i32 = arith.constant 0 : i32
    %c0_i32_0 = arith.constant 0 : i32
    %c0_i32_1 = arith.constant 0 : i32
    return %c0_i32, %c0_i32_0 : i32, i32
  }
  func.func @transform_7(%arg0: i32) -> (i32, i32) {
    %c0_i32 = arith.constant 0 : i32
    %c0_i32_0 = arith.constant 0 : i32
    %c0_i32_1 = arith.constant 0 : i32
    return %c0_i32, %c0_i32_0 : i32, i32
  }
  func.func @transform_8(%arg0: i32) -> (i32, i32) {
    %c0_i32 = arith.constant 0 : i32
    %c0_i32_0 = arith.constant 0 : i32
    %c0_i32_1 = arith.constant 0 : i32
    return %c0_i32, %c0_i32_0 : i32, i32
  }
  func.func @transform_9(%arg0: i32) -> (i32, i32) {
    %c0_i32 = arith.constant 0 : i32
    %c0_i32_0 = arith.constant 0 : i32
    %c0_i32_1 = arith.constant 0 : i32
    return %c0_i32, %c0_i32_0 : i32, i32
  }
  func.func @transform_10(%arg0: i32) -> (i32, i32, i32) {
    %c0_i32 = arith.constant 0 : i32
    %c0_i32_0 = arith.constant 0 : i32
    %c0_i32_1 = arith.constant 0 : i32
    return %arg0, %c0_i32, %c0_i32_0 : i32, i32, i32
  }
}

</mosaic_0001>

<bundles_post_ra>
// kernel: _lambda_.1
= control target key start
LH: loop header
LB: loop body
LE: loop exit
PB: predicated region body
PF: predicated region fallthrough
CT: control target
= control target key end

     0   :  { %s2783_s13 = smov 0   ;;  %s3454_s0 = inlined_call_operand.vmem [shape: f32[2,16,128], index: 0, kind: input, shape index: {}]   ;;  %s3455_s1 = inlined_call_operand.vmem [shape: f32[3,128,128], index: 1, kind: input, shape index: {}]   ;;  %s3456_s2 = inlined_call_operand.vmem [shape: f32[1,128], index: 2, kind: input, shape index: {}]   ;;  %s3457_s3 = inlined_call_operand.vmem [shape: f32[3,128,128], index: 3, kind: input, shape index: {}]   ;;  %s3458_s4 = inlined_call_operand.vmem [shape: f32[1,128], index: 4, kind: input, shape index: {}]   ;;  %s3459_s5 = inlined_call_operand.vmem [shape: f32[3,16,16], index: 5, kind: input, shape index: {}]   ;;  %s3460_s6 = inlined_call_operand.vmem [shape: f32[128,128], index: 6, kind: input, shape index: {}, may-alias: {6,7}]   ;;  %s3461_s7 = inlined_call_operand.vmem [shape: f32[128,128], index: 7, kind: input, shape index: {}, may-alias: {6,7}]   ;;  %s3462_s8 = inlined_call_operand.vmem [shape: f32[32,16], index: 8, kind: input, shape index: {}]   ;;  %s3463_s9 = inlined_call_operand.vmem [shape: f32[128,256], index: 9, kind: input, shape index: {}]   ;;  %s3464_s10 = inlined_call_operand.vmem [shape: f32[2,32,256], index: 10, kind: output, shape index: {}]  }
   0x1 LB: > { %s1939_s14 = sadd.s32 4294967295, %s2724_s13   ;;  %p1943_p0 = scmp.ge.s32.totalorder %s2724_s13, 1  ;;  %s2724_s13 = sphi %s2783_s13, %s20_s13  }
   0x2   : > { %p312_p1 = scmp.lt.s32.totalorder %s2724_s13, 3 }
   0x4   : > { %p313_p2 = pnand %p1943_p0, %p312_p1 }
   0x5   : > { %v1948_v0 = vld [vmem:[%s3455_s1 + $0x80] sm:$0xff] (!%p313_p2)  ;;  %v1949_v1 = vld [vmem:[%s3455_s1 + $0x88] sm:$0xff] (!%p313_p2)  ;;  %v1950_v2 = vld [vmem:[%s3455_s1 + $0x90] sm:$0xff] (!%p313_p2)  ;;  %v2726_v3 = vmov (!%p313_p2), 0.0   ;;  %vm2727_vm0 = vmmov (!%p313_p2), 0   ;;  %p350_p3 = scmp.lt.s32.totalorder (!%p313_p2), %s1939_s14, 1 }
   0x6   : > { %316 = sbr.rel (%p313_p2) target bundleno = 2232 (0x8b8), region = 60  ;;  %2208 = vmatprep.subr.bf16.mxu1 (!%p313_p2), %v2726_v3  ;;  %v448_v4 = vpack.c.bf16 (!%p313_p2), %v1949_v1, %v1948_v0  ;;  %v1951_v5 = vld [vmem:[%s3455_s1 + $0x98] sm:$0xff] (!%p313_p2)  ;;  %2188 = vmatprep.subr.bf16.mxu0 (!%p313_p2), %v2726_v3  ;;  %v1952_v7 = vld [vmem:[%s3455_s1 + $0xa0] sm:$0xff] (!%p313_p2)  ;;  %v1953_v8 = vld [vmem:[%s3455_s1 + $0xa8] sm:$0xff] (!%p313_p2)  ;;  %vm500_vm1 = vcmask (!%p313_p2), 130048  }
   0x7   : > { %2224 = vmatprep.mubr.msk.bf16.mxu1 (!%p313_p2), %vm2727_vm0, %v2726_v3  ;;  %2204 = vmatprep.mubr.msk.bf16.mxu0 (!%p313_p2), %vm2727_vm0, %v2726_v3  ;;  %v449_v6 = vpack.c.bf16 (!%p313_p2), %v1951_v5, %v1950_v2  ;;  %v364_v9 = vld [vmem:[%s3455_s1] sm:$0xff] (!%p313_p2)  ;;  %v365_v10 = vld [vmem:[%s3455_s1 + $0x8] sm:$0xff] (!%p313_p2)  ;;  %v366_v12 = vld [vmem:[%s3455_s1 + $0x10] sm:$0xff] (!%p313_p2)  ;;  %v450_v14 = vpack.c.bf16 (!%p313_p2), %v1953_v8, %v1952_v7 }
   0x8   : > { %2209 = vmatpush3.bf16.msra.mxu1 (!%p313_p2), %v448_v4  ;;  %v380_v11 = vpack.c.bf16 (!%p313_p2), %v365_v10, %v364_v9  ;;  %v367_v13 = vld [vmem:[%s3455_s1 + $0x18] sm:$0xff] (!%p313_p2)  ;;  %v1954_v15 = vld [vmem:[%s3455_s1 + $0xb0] sm:$0xff] (!%p313_p2)  ;;  %v368_v18 = vld [vmem:[%s3455_s1 + $0x20] sm:$0xff] (!%p313_p2) }
   0x9   : > { %2210 = vmatprep.subr.bf16.mxu1 (!%p313_p2), %v2726_v3  ;;  %v381_v16 = vpack.c.bf16 (!%p313_p2), %v367_v13, %v366_v12  ;;  %v1955_v17 = vld [vmem:[%s3455_s1 + $0xb8] sm:$0xff] (!%p313_p2)  ;;  %v369_v19 = vld [vmem:[%s3455_s1 + $0x28] sm:$0xff] (!%p313_p2)  ;;  %v1956_v21 = vld [vmem:[%s3455_s1 + $0xc0] sm:$0xff] (!%p313_p2) }
   0xa   : > { %2189 = vmatpush3.bf16.msra.mxu0 (!%p313_p2), %v380_v11  ;;  %v451_v20 = vpack.c.bf16 (!%p313_p2), %v1955_v17, %v1954_v15  ;;  %v382_v22 = vpack.c.bf16 (!%p313_p2), %v369_v19, %v368_v18  ;;  %v1957_v23 = vld [vmem:[%s3455_s1 + $0xc8] sm:$0xff] (!%p313_p2)  ;;  %v370_v24 = vld [vmem:[%s3455_s1 + $0x30] sm:$0xff] (!%p313_p2)  ;;  %v371_v25 = vld [vmem:[%s3455_s1 + $0x38] sm:$0xff] (!%p313_p2) }
   0xb   : > { %2190 = vmatprep.subr.bf16.mxu0 (!%p313_p2), %v2726_v3  ;;  %v452_v26 = vpack.c.bf16 (!%p313_p2), %v1957_v23, %v1956_v21  ;;  %v1958_v27 = vld [vmem:[%s3455_s1 + $0xd0] sm:$0xff] (!%p313_p2)  ;;  %v383_v28 = vpack.c.bf16 (!%p313_p2), %v371_v25, %v370_v24  ;;  %v1959_v29 = vld [vmem:[%s3455_s1 + $0xd8] sm:$0xff] (!%p313_p2)  ;;  %v372_v30 = vld [vmem:[%s3455_s1 + $0x40] sm:$0xff] (!%p313_p2) }
   0xc   : > { %2211 = vmatpush3.bf16.msra.mxu1 (!%p313_p2), %v449_v6  ;;  %v373_v31 = vld [vmem:[%s3455_s1 + $0x48] sm:$0xff] (!%p313_p2)  ;;  %v453_v32 = vpack.c.bf16 (!%p313_p2), %v1959_v29, %v1958_v27  ;;  %v1960_v33 = vld [vmem:[%s3455_s1 + $0xe0] sm:$0xff] (!%p313_p2)  ;;  %v374_v36 = vld [vmem:[%s3455_s1 + $0x50] sm:$0xff] (!%p313_p2) }
   0xd   : > { %2212 = vmatprep.subr.bf16.mxu1 %v2726_v3  ;;  %s3466_s14 = smov (!%p350_p3, %s1939_s14), 1  ;;  %v384_v34 = vpack.c.bf16 %v373_v31, %v372_v30  ;;  %v1961_v35 = vld [vmem:[%s3455_s1 + $0xe8] sm:$0xff]  ;;  %v375_v37 = vld [vmem:[%s3455_s1 + $0x58] sm:$0xff]  ;;  %v1962_v39 = vld [vmem:[%s3455_s1 + $0xf0] sm:$0xff] }
   0xe   : > { %2191 = vmatpush3.bf16.msra.mxu0 %v381_v16  ;;  %s2036_s11 = sshll.u32 %s3466_s14, 4  ;;  %v454_v38 = vpack.c.bf16 %v1961_v35, %v1960_v33  ;;  %v385_v40 = vpack.c.bf16 %v375_v37, %v374_v36  ;;  %v1963_v41 = vld [vmem:[%s3455_s1 + $0xf8] sm:$0xff]  ;;  %v376_v42 = vld [vmem:[%s3455_s1 + $0x60] sm:$0xff]  ;;  %v377_v43 = vld [vmem:[%s3455_s1 + $0x68] sm:$0xff]  ;;  %s2037_s21 = sshll.u32 %s3466_s14, 6 }
   0xf   : > { %2192 = vmatprep.subr.bf16.mxu0 %v2726_v3  ;;  %s354_s20 = scalar_lea.vmem %s3454_s0, %s2036_s11  ;;  %v455_v44 = vpack.c.bf16 %v1963_v41, %v1962_v39  ;;  %v1970_v47 = vld [vmem:[%s3455_s1 + $0x100] sm:$0xff]  ;;  %v386_v48 = vpack.c.bf16 %v377_v43, %v376_v42  ;;  %v1971_v49 = vld [vmem:[%s3455_s1 + $0x108] sm:$0xff]  ;;  %v378_v50 = vld [vmem:[%s3455_s1 + $0x70] sm:$0xff]  ;;  %s359_s24 = scalar_lea.vmem %s3464_s10, %s2037_s21 }
  0x10   : > { %2213 = vmatpush3.bf16.msra.mxu1 %v450_v14  ;;  %v361_v45 = vld [vmem:[%s354_s20] sm:$0xff]  ;;  %v362_v46 = vld [vmem:[%s354_s20 + $0x8] sm:$0xff]  ;;  %v379_v51 = vld [vmem:[%s3455_s1 + $0x78] sm:$0xff]  ;;  %v680_v53 = vpack.c.bf16 %v1971_v49, %v1970_v47 }
  0x11   : > { %2214 = vmatprep.subr.bf16.mxu1 %v2726_v3  ;;  %v363_v52 = vpack.c.bf16 %v362_v46, %v361_v45  ;;  %v387_v54 = vpack.c.bf16 %v379_v51, %v378_v50  ;;  %v1972_v55 = vld [vmem:[%s3455_s1 + $0x110] sm:$0xff]  ;;  %v1973_v56 = vld [vmem:[%s3455_s1 + $0x118] sm:$0xff]  ;;  %v1974_v58 = vld [vmem:[%s3455_s1 + $0x120] sm:$0xff] }
  0x12   : > { %2193 = vmatpush3.bf16.msra.mxu0 %v382_v22  ;;  %v681_v57 = vpack.c.bf16 %v1973_v56, %v1972_v55  ;;  %v1975_v59 = vld [vmem:[%s3455_s1 + $0x128] sm:$0xff]  ;;  %v1976_v61 = vld [vmem:[%s3455_s1 + $0x130] sm:$0xff]  ;;  %v1977_v62 = vld [vmem:[%s3455_s1 + $0x138] sm:$0xff] }
  0x13   : > { %2194 = vmatprep.subr.bf16.mxu0 %v2726_v3  ;;  %v682_v60 = vpack.c.bf16 %v1975_v59, %v1974_v58  ;;  %v683_v63 = vpack.c.bf16 %v1977_v62, %v1976_v61  ;;  %v1978_v0 = vld [vmem:[%s3455_s1 + $0x140] sm:$0xff]  ;;  %v1979_v1 = vld [vmem:[%s3455_s1 + $0x148] sm:$0xff]  ;;  %v1980_v4 = vld [vmem:[%s3455_s1 + $0x150] sm:$0xff] }
  0x14   : > { %2215 = vmatpush3.bf16.msra.mxu1 %v451_v20  ;;  %v684_v2 = vpack.c.bf16 %v1979_v1, %v1978_v0  ;;  %v1981_v5 = vld [vmem:[%s3455_s1 + $0x158] sm:$0xff]  ;;  %v1982_v7 = vld [vmem:[%s3455_s1 + $0x160] sm:$0xff]  ;;  %v1983_v8 = vld [vmem:[%s3455_s1 + $0x168] sm:$0xff] }
  0x15   : > { %2216 = vmatprep.subr.bf16.mxu1 %v2726_v3  ;;  %v685_v6 = vpack.c.bf16 %v1981_v5, %v1980_v4  ;;  %v686_v9 = vpack.c.bf16 %v1983_v8, %v1982_v7  ;;  %v1984_v10 = vld [vmem:[%s3455_s1 + $0x170] sm:$0xff]  ;;  %v1985_v11 = vld [vmem:[%s3455_s1 + $0x178] sm:$0xff]  ;;  %v2990_v25 = vld [vmem:[%s3459_s5] sm:$0xff] }
  0x16   : > { %2195 = vmatpush3.bf16.msra.mxu0 %v383_v28  ;;  %v687_v12 = vpack.c.bf16 %v1985_v11, %v1984_v10  ;;  %v2978_v13 = vld [vmem:[%s3459_s5 + $0x10] sm:$0xff]  ;;  %v2985_v22 = vld [vmem:[%s3459_s5 + $0x18] sm:$0xff]  ;;  %v3004_v27 = vld [vmem:[%s3459_s5 + $0x20] sm:$0xff] }
  0x17   : > { %2196 = vmatprep.subr.bf16.mxu0 %v2726_v3  ;;  %v3013_v33 = vld [vmem:[%s3459_s5 + $0x28] sm:$0xff]  ;;  %v838_v37 = vld [vmem:[%s3460_s6 + $0x10] sm:$0xff]  ;;  %v844_v46 = vld [vmem:[%s3460_s6 + $0x40] sm:$0xff] }
  0x18   : > { %2217 = vmatpush3.bf16.msra.mxu1 %v452_v26  ;;  %v2999_v26 = vld [vmem:[%s3459_s5 + $0x8] sm:$0xff]  ;;  %v842_v43 = vld [vmem:[%s3460_s6 + $0x30] sm:$0xff]  ;;  %v847_v50 = vld [vmem:[%s3460_s6 + $0x58] sm:$0xff] }
  0x19   : > { %2218 = vmatprep.subr.bf16.mxu1 %v2726_v3  ;;  %v837_v35 = vld [vmem:[%s3460_s6 + $0x8] sm:$0xff]  ;;  %v846_v49 = vld [vmem:[%s3460_s6 + $0x50] sm:$0xff]  ;;  %v851_v56 = vld [vmem:[%s3460_s6 + $0x78] sm:$0xff] }
  0x1a   : > { %2197 = vmatpush3.bf16.msra.mxu0 %v384_v34  ;;  %v836_v34 = vld [vmem:[%s3460_s6] sm:$0xff]  ;;  %v841_v41 = vld [vmem:[%s3460_s6 + $0x28] sm:$0xff]  ;;  %v2522_v51 = vpack.c.bf16 %v847_v50, %v846_v49  ;;  %v850_v55 = vld [vmem:[%s3460_s6 + $0x70] sm:$0xff] }
  0x1b   : > { %2198 = vmatprep.subr.bf16.mxu0 %v2726_v3  ;;  %v2502_v36 = vpack.c.bf16 %v837_v35, %v836_v34  ;;  %v845_v47 = vld [vmem:[%s3460_s6 + $0x48] sm:$0xff]  ;;  %v1990_v58 = vld [vmem:[%s3456_s2] ss:$0 sm:$0xff]  ;;  %v1037_v50 = vld [vmem:[%s3457_s3 + $0x50] sm:$0xff] }
  0x1c   : > { %2219 = vmatpush3.bf16.msra.mxu1 %v453_v32  ;;  %v1995_v34 = vld [vmem:[%s3457_s3 + $0xa0] sm:$0xff] }
  0x1d   : > { %2220 = vmatprep.subr.bf16.mxu1 %v2726_v3 }
  0x1e   : > { %2199 = vmatpush3.bf16.msra.mxu0 %v385_v40  ;;  %v840_v40 = vld [vmem:[%s3460_s6 + $0x20] sm:$0xff] }
  0x1f   : > { %2200 = vmatprep.subr.bf16.mxu0 %v2726_v3  ;;  %v2510_v42 = vpack.c.bf16 %v841_v41, %v840_v40  ;;  %v1997_v40 = vld [vmem:[%s3457_s3 + $0xb0] sm:$0xff] }
  0x20   : > { %2221 = vmatpush3.bf16.msra.mxu1 %v454_v38  ;;  %v839_v38 = vld [vmem:[%s3460_s6 + $0x18] sm:$0xff] }
  0x21   : > { %2222 = vmatprep.subr.bf16.mxu1 %v2726_v3  ;;  %v2506_v39 = vpack.c.bf16 %v839_v38, %v838_v37  ;;  %v1033_v38 = vld [vmem:[%s3457_s3 + $0x30] sm:$0xff] }
  0x22   : > { %2201 = vmatpush3.bf16.msra.mxu0 %v386_v48  ;;  %v2518_v48 = vpack.c.bf16 %v845_v47, %v844_v46  ;;  %v1999_v46 = vld [vmem:[%s3457_s3 + $0xc0] sm:$0xff] }
  0x23   : > { %2202 = vmatprep.subr.bf16.mxu0 %v2726_v3 }
  0x24   : > { %2223 = vmatpush3.bf16.msra.mxu1 %v455_v44  ;;  %v843_v44 = vld [vmem:[%s3460_s6 + $0x38] sm:$0xff] }
  0x25   : > { %2242 = vmatprep.subr.bf16.mxu1 %v2726_v3  ;;  %v2514_v45 = vpack.c.bf16 %v843_v44, %v842_v43  ;;  %v1035_v44 = vld [vmem:[%s3457_s3 + $0x40] sm:$0xff] }
  0x26   : > { %2203 = vmatpush3.bf16.msra.mxu0 %v387_v54 }
  0x27   : > { %2225 = vmatmul.mubr.bf16.vlgmr.msra.gmra.mrb[0].mxu1 %v363_v52 }
  0x28   : > { %2243 = vmatpush3.bf16.msra.mxu1 %v680_v53  ;;  %2258 = vmatprep.mubr.msk.bf16.mxu1 %vm2727_vm0, %v2726_v3  ;;  %v849_v53 = vld [vmem:[%s3460_s6 + $0x68] sm:$0xff] }
  0x29   : > { %2244 = vmatprep.subr.bf16.mxu1 %v2726_v3  ;;  %2205 = vmatmul.mubr.bf16.vlgmr.msra.gmra.mrb[0].mxu0 %v363_v52 }
  0x2a   : > { %2232 = vmatprep.mubr.msk.f32.mxu0 %vm500_vm1, %v2978_v13 }
  0x2c   : > { %2245 = vmatpush3.bf16.msra.mxu1 %v681_v57  ;;  %v2530_v57 = vpack.c.bf16 %v851_v56, %v850_v55  ;;  %v1039_v55 = vld [vmem:[%s3457_s3 + $0x60] sm:$0xff]  ;;  %v1040_v56 = vld [vmem:[%s3457_s3 + $0x68] sm:$0xff] }
  0x2d   : > { %2246 = vmatprep.subr.bf16.mxu1 %v2726_v3 }
  0x30   : > { %2247 = vmatpush3.bf16.msra.mxu1 %v682_v60 }
  0x31   : > { %2248 = vmatprep.subr.bf16.mxu1 %v2726_v3 }
  0x34   : > { %2249 = vmatpush3.bf16.msra.mxu1 %v683_v63 }
  0x35   : > { %2250 = vmatprep.subr.bf16.mxu1 %v2726_v3 }
  0x38   : > { %2251 = vmatpush3.bf16.msra.mxu1 %v684_v2 }
  0x39   : > { %2252 = vmatprep.subr.bf16.mxu1 %v2726_v3 }
  0x3c   : > { %2253 = vmatpush3.bf16.msra.mxu1 %v685_v6 }
  0x3d   : > { %2254 = vmatprep.subr.bf16.mxu1 %v2726_v3 }
  0x40   : > { %2255 = vmatpush3.bf16.msra.mxu1 %v686_v9 }
  0x41   : > { %2256 = vmatprep.subr.bf16.mxu1 %v2726_v3 }
  0x44   : > { %2257 = vmatpush3.bf16.msra.mxu1 %v687_v12 }
  0x45   : > { %2535 = vmatprep.subr.bf16.mxu1 %v2502_v36 }
  0x47   : > { %2259 = vmatmul.mubr.bf16.vlgmr.msra.gmra.mrb[4].mxu1 %v363_v52  ;;  %v848_v52 = vld [vmem:[%s3460_s6 + $0x60] sm:$0xff] }
  0x48   : > { %2537 = vmatpush3.bf16.msra.mxu1 %v2502_v36  ;;  %v2526_v54 = vpack.c.bf16 %v849_v53, %v848_v52  ;;  %v2001_v52 = vld [vmem:[%s3457_s3 + $0xd0] sm:$0xff] }
  0x49   : > { %2539 = vmatprep.subr.bf16.mxu1 %v2506_v39 }
  0x4c   : > { %2541 = vmatpush3.bf16.msra.mxu1 %v2506_v39 }
  0x4d   : > { %2543 = vmatprep.subr.bf16.mxu1 %v2510_v42 }
  0x50   : > { %2545 = vmatpush3.bf16.msra.mxu1 %v2510_v42 }
  0x51   : > { %2547 = vmatprep.subr.bf16.mxu1 %v2514_v45 }
  0x54   : > { %2549 = vmatpush3.bf16.msra.mxu1 %v2514_v45 }
  0x55   : > { %2551 = vmatprep.subr.bf16.mxu1 %v2518_v48 }
  0x58   : > { %2553 = vmatpush3.bf16.msra.mxu1 %v2518_v48 }
  0x59   : > { %2555 = vmatprep.subr.bf16.mxu1 %v2522_v51 }
  0x5c   : > { %2557 = vmatpush3.bf16.msra.mxu1 %v2522_v51 }
  0x5d   : > { %2559 = vmatprep.subr.bf16.mxu1 %v2526_v54 }
  0x60   : > { %2561 = vmatpush3.bf16.msra.mxu1 %v2526_v54 }
  0x61   : > { %2563 = vmatprep.subr.bf16.mxu1 %v2530_v57 }
  0x64   : > { %2565 = vmatpush3.bf16.msra.mxu1 %v2530_v57 }
  0x65   : > { %2359 = vmatprep.subr.bf16.mxu1 %v2726_v3 }
  0xfa   : > { %v490_v14 = vpop.f32.mrb[0].mxu1 }
  0xfb   : > { %v2226_v15 = vpop.f32.mrb[1].mxu1 }
  0xfc   : > { %v493_v16 = vpop.f32.mrb[2].mxu1  ;;  %v422_v19 = vpop.f32.mrb[0].mxu0  ;;  %v1027_v15 = vld [vmem:[%s3457_s3] sm:$0xff] }
  0xfd   : > { %v2490_v17 = vpack.c.bf16 %v493_v16, %v490_v14  ;;  %v2227_v18 = vpop.f32.mrb[3].mxu1  ;;  %v2206_v20 = vpop.f32.mrb[1].mxu0  ;;  %v1028_v16 = vld [vmem:[%s3457_s3 + $0x8] sm:$0xff] }
  0xfe   : > { %v425_v21 = vpop.f32.mrb[2].mxu0  ;;  %v1043_v18 = vpack.c.bf16 %v1028_v16, %v1027_v15 }
  0xff   : > { %2491 = vmatprep.subr.bf16.mxu0 %v2490_v17  ;;  %v2494_v23 = vpack.c.bf16 %v425_v21, %v422_v19  ;;  %v2207_v24 = vpop.f32.mrb[3].mxu0  ;;  %v1992_v19 = vld [vmem:[%s3457_s3 + $0x88] sm:$0xff]  ;;  %v1029_v21 = vld [vmem:[%s3457_s3 + $0x10] sm:$0xff] }
 0x100   : > { %2493 = vmatpush3.bf16.msra.mxu0 %v2490_v17  ;;  %v1991_v17 = vld [vmem:[%s3457_s3 + $0x80] sm:$0xff]  ;;  %v1993_v24 = vld [vmem:[%s3457_s3 + $0x90] sm:$0xff] }
 0x101   : > { %2495 = vmatprep.subr.bf16.mxu0 %v2494_v23  ;;  %v1109_v20 = vpack.c.bf16 %v1992_v19, %v1991_v17 }
 0x103   : > { %2233 = vmatmul.mubr.msk.f32.vlgmr.msra.gmra.mrb[4].mxu0 %vm500_vm1, %v2985_v22 }
 0x104   : > { %2497 = vmatpush3.bf16.msra.mxu0 %v2494_v23  ;;  %2239 = vmatprep.mubr.msk.f32.mxu0 %vm500_vm1, %v2990_v25  ;;  %v1030_v23 = vld [vmem:[%s3457_s3 + $0x18] sm:$0xff] }
 0x10b   : > { %2240 = vmatmul.mubr.msk.f32.vlgmr.msra.gmra.mrb[4].mxu0 %vm500_vm1, %v2999_v26 }
 0x10c   : > { %2266 = vmatprep.mubr.msk.f32.mxu0 %vm500_vm1, %v3004_v27 }
 0x11a   : > { %v722_v28 = vpop.f32.mrb[4].mxu1 }
 0x11b   : > { %v2260_v29 = vpop.f32.mrb[5].mxu1 }
 0x11c   : > { %v725_v30 = vpop.f32.mrb[6].mxu1  ;;  %v1994_v29 = vld [vmem:[%s3457_s3 + $0x98] sm:$0xff] }
 0x11d   : > { %v2498_v31 = vpack.c.bf16 %v725_v30, %v722_v28  ;;  %v2261_v32 = vpop.f32.mrb[7].mxu1  ;;  %v1044_v28 = vpack.c.bf16 %v1030_v23, %v1029_v21  ;;  %v1110_v30 = vpack.c.bf16 %v1994_v29, %v1993_v24 }
 0x11e   : > { %v1032_v32 = vld [vmem:[%s3457_s3 + $0x28] sm:$0xff] }
 0x11f   : > { %2499 = vmatprep.subr.bf16.mxu0 %v2498_v31 }
 0x120   : > { %2501 = vmatpush3.bf16.msra.mxu0 %v2498_v31  ;;  %v1031_v31 = vld [vmem:[%s3457_s3 + $0x20] sm:$0xff] }
 0x121   : > { %2503 = vmatprep.subr.bf16.mxu0 %v2502_v36  ;;  %v1045_v35 = vpack.c.bf16 %v1032_v32, %v1031_v31 }
 0x123   : > { %2267 = vmatmul.mubr.msk.f32.vlgmr.msra.gmra.mrb[4].mxu0 %vm500_vm1, %v3013_v33 }
 0x124   : > { %2505 = vmatpush3.bf16.msra.mxu0 %v2502_v36  ;;  %v1996_v36 = vld [vmem:[%s3457_s3 + $0xa8] sm:$0xff] }
 0x125   : > { %2507 = vmatprep.subr.bf16.mxu0 %v2506_v39  ;;  %v1111_v37 = vpack.c.bf16 %v1996_v36, %v1995_v34 }
 0x128   : > { %2509 = vmatpush3.bf16.msra.mxu0 %v2506_v39  ;;  %v1034_v39 = vld [vmem:[%s3457_s3 + $0x38] sm:$0xff] }
 0x129   : > { %2511 = vmatprep.subr.bf16.mxu0 %v2510_v42  ;;  %v1046_v41 = vpack.c.bf16 %v1034_v39, %v1033_v38 }
 0x12c   : > { %2513 = vmatpush3.bf16.msra.mxu0 %v2510_v42  ;;  %v1998_v42 = vld [vmem:[%s3457_s3 + $0xb8] sm:$0xff] }
 0x12d   : > { %2515 = vmatprep.subr.bf16.mxu0 %v2514_v45  ;;  %v1112_v43 = vpack.c.bf16 %v1998_v42, %v1997_v40 }
 0x130   : > { %2517 = vmatpush3.bf16.msra.mxu0 %v2514_v45  ;;  %v1036_v45 = vld [vmem:[%s3457_s3 + $0x48] sm:$0xff] }
 0x131   : > { %2519 = vmatprep.subr.bf16.mxu0 %v2518_v48  ;;  %v1047_v47 = vpack.c.bf16 %v1036_v45, %v1035_v44 }
 0x134   : > { %2521 = vmatpush3.bf16.msra.mxu0 %v2518_v48  ;;  %v2000_v48 = vld [vmem:[%s3457_s3 + $0xc8] sm:$0xff] }
 0x135   : > { %2523 = vmatprep.subr.bf16.mxu0 %v2522_v51  ;;  %v1113_v49 = vpack.c.bf16 %v2000_v48, %v1999_v46 }
 0x138   : > { %2525 = vmatpush3.bf16.msra.mxu0 %v2522_v51  ;;  %v1038_v51 = vld [vmem:[%s3457_s3 + $0x58] sm:$0xff] }
 0x139   : > { %2527 = vmatprep.subr.bf16.mxu0 %v2526_v54  ;;  %v1048_v53 = vpack.c.bf16 %v1038_v51, %v1037_v50  ;;  %v2013_v50 = vld [vmem:[%s3457_s3 + $0x110] sm:$0xff]  ;;  %v2015_v51 = vld [vmem:[%s3457_s3 + $0x120] sm:$0xff] }
 0x13c   : > { %2529 = vmatpush3.bf16.msra.mxu0 %v2526_v54  ;;  %v2002_v54 = vld [vmem:[%s3457_s3 + $0xd8] sm:$0xff] }
 0x13d   : > { %2531 = vmatprep.subr.bf16.mxu0 %v2530_v57 }
 0x140   : > { %2533 = vmatpush3.bf16.msra.mxu0 %v2530_v57  ;;  %v1114_v57 = vpack.c.bf16 %v2002_v54, %v2001_v52  ;;  %v2016_v52 = vld [vmem:[%s3457_s3 + $0x128] sm:$0xff]  ;;  %v2018_v54 = vld [vmem:[%s3457_s3 + $0x138] sm:$0xff] }
 0x141   : > { %2339 = vmatprep.subr.bf16.mxu0 %v2726_v3 }
 0x1f6   : > { %v2268_v59 = vpop.f32.mrb[4].mxu0 }
 0x1f7   : > { %v823_v60 = vadd.f32 %v2268_v59, %v1990_v58  ;;  %v804_v61 = vpop.f32.mrb[5].mxu0  ;;  %v2004_v59 = vld [vmem:[%s3457_s3 + $0xe8] sm:$0xff] }
 0x1f8   : > { %v822_v62 = vadd.f32 %v1990_v58, %v804_v61  ;;  %v2003_v58 = vld [vmem:[%s3457_s3 + $0xe0] sm:$0xff] }
 0x1f9   : > { %v825_v63 = vsub.f32 0.0, %v823_v60  ;;  %v1115_v61 = vpack.c.bf16 %v2004_v59, %v2003_v58  ;;  %v2021_v59 = vld [vmem:[%s3457_s3 + $0x150] sm:$0xff] }
 0x1fa   : > { %v824_v0 = vsub.f32 0.0, %v822_v62 }
 0x1fb   : > { %v828_v1 = vmul.f32 1.442695, %v825_v63  ;;  %v1042_v63 = vld [vmem:[%s3457_s3 + $0x78] sm:$0xff] }
 0x1fc   : > { %v826_v2 = vmul.f32 1.442695, %v824_v0  ;;  %v2005_v0 = vld [vmem:[%s3457_s3 + $0xf0] sm:$0xff] }
 0x1fd   : > { %2698 = vpow2.f32 %v828_v1  ;;  %v2006_v1 = vld [vmem:[%s3457_s3 + $0xf8] sm:$0xff] }
 0x1fe   : > { %2700 = vpow2.f32 %v826_v2 }
 0x207   : > { %v2699_v4 = vpop.eup %2698 }
 0x208   : > { %v2701_v5 = vpop.eup %2700  ;;  %v831_v6 = vadd.f32 1.0, %v2699_v4  ;;  %v1116_v4 = vpack.c.bf16 %v2006_v1, %v2005_v0  ;;  %v2025_v1 = vld [vmem:[%s3457_s3 + $0x170] sm:$0xff] }
 0x209   : > { %v830_v7 = vadd.f32 1.0, %v2701_v5 }
 0x20a   : > { %2702 = vrcp.f32 %v831_v6 }
 0x20b   : > { %2704 = vrcp.f32 %v830_v7 }
 0x214   : > { %v2703_v8 = vpop.eup %2702 }
 0x215   : > { %v2705_v9 = vpop.eup %2704  ;;  %v3070_v10 = vmul.f32 %v2703_v8, %v823_v60  ;;  %v1049_v60 = vpack.c.bf16 %v1040_v56, %v1039_v55  ;;  %v2019_v56 = vld [vmem:[%s3457_s3 + $0x140] sm:$0xff] }
 0x216   : > { %v3072_v11 = vmul.f32 %v2705_v9, %v822_v62  ;;  %v1041_v62 = vld [vmem:[%s3457_s3 + $0x70] sm:$0xff] }
 0x217   : > { %v935_v14 = vmul.f32 %v3070_v10, %v3070_v10  ;;  %v1050_v2 = vpack.c.bf16 %v1042_v63, %v1041_v62  ;;  %v2023_v62 = vld [vmem:[%s3457_s3 + $0x160] sm:$0xff]  ;;  %v2024_v63 = vld [vmem:[%s3457_s3 + $0x168] sm:$0xff] }
 0x218   : > { %2301 = vmatprep.mubr.f32.mxu0 %v3072_v11  ;;  %v934_v12 = vmul.f32 %v3072_v11, %v3072_v11  ;;  %v1331_v0 = vpack.c.bf16 %v2024_v63, %v2023_v62  ;;  %v1666_v62 = vld [vmem:[%s3463_s9 + $0x20] sm:$0xff]  ;;  %v1668_v63 = vld [vmem:[%s3463_s9 + $0x30] sm:$0xff] }
 0x219   : > { %2302 = vmatmul.mubr.f32.vlgmr.msra.gmra.mrb[6].mxu0 %v3070_v10 }
 0x21a   : > { %2336 = vmatprep.mubr.f32.mxu1 %v934_v12  ;;  %2355 = vmatprep.mubr.msk.bf16.mxu0 %vm2727_vm0, %v2726_v3 }
 0x21b   : > { %2337 = vmatmul.mubr.f32.vlgmr.msra.gmra.mrb[8].mxu1 %v935_v14  ;;  %2340 = vmatpush3.bf16.msra.mxu0 %v1043_v18 }
 0x21c   : > { %2375 = vmatprep.mubr.msk.bf16.mxu1 %vm2727_vm0, %v2726_v3  ;;  %2360 = vmatpush3.bf16.msra.mxu1 %v1109_v20 }
 0x21d   : > { %2341 = vmatprep.subr.bf16.mxu0 %v2726_v3  ;;  %2361 = vmatprep.subr.bf16.mxu1 %v2726_v3 }
 0x21f   : > { %2342 = vmatpush3.bf16.msra.mxu0 %v1044_v28 }
 0x220   : > { %2362 = vmatpush3.bf16.msra.mxu1 %v1110_v30  ;;  %2343 = vmatprep.subr.bf16.mxu0 %v2726_v3 }
 0x221   : > { %2363 = vmatprep.subr.bf16.mxu1 %v2726_v3 }
 0x223   : > { %2344 = vmatpush3.bf16.msra.mxu0 %v1045_v35 }
 0x224   : > { %2364 = vmatpush3.bf16.msra.mxu1 %v1111_v37  ;;  %2345 = vmatprep.subr.bf16.mxu0 %v2726_v3 }
 0x225   : > { %2365 = vmatprep.subr.bf16.mxu1 %v2726_v3 }
 0x227   : > { %2346 = vmatpush3.bf16.msra.mxu0 %v1046_v41 }
 0x228   : > { %2366 = vmatpush3.bf16.msra.mxu1 %v1112_v43  ;;  %2347 = vmatprep.subr.bf16.mxu0 %v2726_v3 }
 0x229   : > { %2367 = vmatprep.subr.bf16.mxu1 %v2726_v3 }
 0x22b   : > { %2348 = vmatpush3.bf16.msra.mxu0 %v1047_v47 }
 0x22c   : > { %2368 = vmatpush3.bf16.msra.mxu1 %v1113_v49  ;;  %2349 = vmatprep.subr.bf16.mxu0 %v2726_v3 }
 0x22d   : > { %2369 = vmatprep.subr.bf16.mxu1 %v2726_v3 }
 0x22f   : > { %2350 = vmatpush3.bf16.msra.mxu0 %v1048_v53  ;;  %v1327_v53 = vpack.c.bf16 %v2016_v52, %v2015_v51 }
 0x230   : > { %2370 = vmatpush3.bf16.msra.mxu1 %v1114_v57  ;;  %2351 = vmatprep.subr.bf16.mxu0 %v2726_v3  ;;  %v2020_v57 = vld [vmem:[%s3457_s3 + $0x148] sm:$0xff] }
 0x231   : > { %2371 = vmatprep.subr.bf16.mxu1 %v2726_v3  ;;  %v1329_v58 = vpack.c.bf16 %v2020_v57, %v2019_v56  ;;  %v1662_v56 = vld [vmem:[%s3463_s9] sm:$0xff]  ;;  %v1664_v57 = vld [vmem:[%s3463_s9 + $0x10] sm:$0xff] }
 0x233   : > { %2352 = vmatpush3.bf16.msra.mxu0 %v1049_v60  ;;  %v2022_v60 = vld [vmem:[%s3457_s3 + $0x158] sm:$0xff] }
 0x234   : > { %2372 = vmatpush3.bf16.msra.mxu1 %v1115_v61  ;;  %2353 = vmatprep.subr.bf16.mxu0 %v2726_v3  ;;  %v1330_v61 = vpack.c.bf16 %v2022_v60, %v2021_v59  ;;  %v1667_v59 = vld [vmem:[%s3463_s9 + $0x28] sm:$0xff]  ;;  %v1669_v60 = vld [vmem:[%s3463_s9 + $0x38] sm:$0xff] }
 0x235   : > { %2373 = vmatprep.subr.bf16.mxu1 %v2726_v3 }
 0x237   : > { %2354 = vmatpush3.bf16.msra.mxu0 %v1050_v2  ;;  %v2026_v2 = vld [vmem:[%s3457_s3 + $0x178] sm:$0xff] }
 0x238   : > { %2374 = vmatpush3.bf16.msra.mxu1 %v1116_v4  ;;  %v1332_v4 = vpack.c.bf16 %v2026_v2, %v2025_v1  ;;  %v1671_v1 = vld [vmem:[%s3463_s9 + $0x48] sm:$0xff]  ;;  %v1673_v2 = vld [vmem:[%s3463_s9 + $0x58] sm:$0xff] }
 0x2ec   : > { %v2303_v5 = vpop.f32.mrb[6].mxu0 }
 0x2ed   : > { %v918_v6 = vpop.f32.mrb[7].mxu0 }
 0x2ee   : > { %v927_v7 = vadd.f32 %v2303_v5, %v918_v6  ;;  %v2338_v8 = vpop.f32.mrb[8].mxu1 }
 0x2ef   : > { %v1002_v9 = vpop.f32.mrb[9].mxu1 }
 0x2f0   : > { %v928_v12 = vrot.slane %v927_v7, 4  ;;  %v1011_v14 = vadd.f32 %v2338_v8, %v1002_v9 }
 0x2f2   : > { %v929_v15 = vadd.f32 %v928_v12, %v927_v7  ;;  %v1012_v16 = vrot.slane %v1011_v14, 4  ;;  %v1472_v12 = vld [vmem:[%s3461_s7] sm:$0xff] }
 0x2f4   : > { %v930_v17 = vrot.slane %v929_v15, 2  ;;  %v1013_v18 = vadd.f32 %v1012_v16, %v1011_v14 }
 0x2f6   : > { %v931_v19 = vadd.f32 %v930_v17, %v929_v15  ;;  %v1014_v20 = vrot.slane %v1013_v18, 2  ;;  %v1474_v15 = vld [vmem:[%s3461_s7 + $0x10] sm:$0xff]  ;;  %v1476_v17 = vld [vmem:[%s3461_s7 + $0x20] sm:$0xff] }
 0x2f8   : > { %v932_v21 = vrot.slane %v931_v19, 1  ;;  %v1015_v23 = vadd.f32 %v1014_v20, %v1013_v18  ;;  %v1477_v18 = vld [vmem:[%s3461_s7 + $0x28] sm:$0xff]  ;;  %v1478_v20 = vld [vmem:[%s3461_s7 + $0x30] sm:$0xff] }
 0x2fa   : > { %v933_v24 = vadd.f32 %v932_v21, %v931_v19  ;;  %v1016_v28 = vrot.slane %v1015_v23, 1  ;;  %v2586_v19 = vpack.c.bf16 %v1477_v18, %v1476_v17  ;;  %v1479_v21 = vld [vmem:[%s3461_s7 + $0x38] sm:$0xff]  ;;  %v1678_v18 = vld [vmem:[%s3463_s9 + $0x80] sm:$0xff] }
 0x2fc   : > { %v1017_v29 = vadd.f32 %v1016_v28, %v1015_v23  ;;  %v1018_v30 = vmul.f32 %v933_v24, %v933_v24  ;;  %v1020_v34 = vsub.f32 %v3072_v11, %v933_v24  ;;  %v1021_v35 = vsub.f32 %v3070_v10, %v933_v24  ;;  %v2012_v10 = vld [vmem:[%s3457_s3 + $0x108] sm:$0xff]  ;;  %v1480_v24 = vld [vmem:[%s3461_s7 + $0x40] sm:$0xff] }
 0x2fd   : > { %v2590_v23 = vpack.c.bf16 %v1479_v21, %v1478_v20  ;;  %v1481_v28 = vld [vmem:[%s3461_s7 + $0x48] sm:$0xff] }
 0x2fe   : > { %v1019_v31 = vsub.f32 %v1017_v29, %v1018_v30  ;;  %v2594_v29 = vpack.c.bf16 %v1481_v28, %v1480_v24  ;;  %v1482_v30 = vld [vmem:[%s3461_s7 + $0x50] sm:$0xff]  ;;  %v1683_v21 = vld [vmem:[%s3463_s9 + $0xa8] sm:$0xff]  ;;  %v1682_v28 = vld [vmem:[%s3463_s9 + $0xa0] sm:$0xff] }
 0x300   : > { %v1022_v32 = vadd.f32 1e-05, %v1019_v31  ;;  %v1483_v31 = vld [vmem:[%s3461_s7 + $0x58] sm:$0xff] }
 0x302   : > { %2706 = vrsqrt.f32 %v1022_v32  ;;  %v2598_v32 = vpack.c.bf16 %v1483_v31, %v1482_v30  ;;  %v1687_v31 = vld [vmem:[%s3463_s9 + $0xc8] sm:$0xff] }
 0x30c   : > { %v2707_v36 = vpop.eup %2706 }
 0x30d   : > { %v1024_v37 = vmul.f32 %v2707_v36, %v1020_v34  ;;  %v1025_v38 = vmul.f32 %v2707_v36, %v1021_v35  ;;  %v1484_v34 = vld [vmem:[%s3461_s7 + $0x60] sm:$0xff]  ;;  %v1485_v35 = vld [vmem:[%s3461_s7 + $0x68] sm:$0xff] }
 0x30e   : > { %v2602_v36 = vpack.c.bf16 %v1485_v35, %v1484_v34  ;;  %v1686_v34 = vld [vmem:[%s3463_s9 + $0xc0] sm:$0xff] }
 0x30f   : > { %v1026_v39 = vpack.c.bf16 %v1025_v38, %v1024_v37  ;;  %v1486_v37 = vld [vmem:[%s3461_s7 + $0x70] sm:$0xff]  ;;  %v1487_v38 = vld [vmem:[%s3461_s7 + $0x78] sm:$0xff] }
 0x311   : > { %2356 = vmatmul.mubr.bf16.vlgmr.msra.gmra.mrb[8].mxu0 %v1026_v39  ;;  %2376 = vmatmul.mubr.bf16.vlgmr.msra.gmra.mrb[12].mxu1 %v1026_v39 }
 0x312   : > { %2383 = vmatprep.mubr.msk.f32.mxu0 %vm500_vm1, %v2978_v13  ;;  %v2011_v13 = vld [vmem:[%s3457_s3 + $0x100] sm:$0xff] }
 0x313   : > { %v1325_v49 = vpack.c.bf16 %v2012_v10, %v2011_v13 }
 0x3e4   : > { %v1085_v40 = vpop.f32.mrb[8].mxu0  ;;  %v1151_v41 = vpop.f32.mrb[12].mxu1 }
 0x3e5   : > { %v2357_v42 = vpop.f32.mrb[9].mxu0  ;;  %v2377_v43 = vpop.f32.mrb[13].mxu1 }
 0x3e6   : > { %v1088_v44 = vpop.f32.mrb[10].mxu0  ;;  %v1154_v45 = vpop.f32.mrb[14].mxu1 }
 0x3e7   : > { %v2570_v46 = vpack.c.bf16 %v1088_v44, %v1085_v40  ;;  %v2566_v47 = vpack.c.bf16 %v1154_v45, %v1151_v41  ;;  %v2358_v11 = vpop.f32.mrb[11].mxu0  ;;  %v2378_v48 = vpop.f32.mrb[15].mxu1  ;;  %v2029_v40 = vld [vmem:[%s3458_s4] ss:$0 sm:$0xff] }
 0x3e9   : > { %2567 = vmatprep.subr.bf16.mxu0 %v2566_v47 }
 0x3ea   : > { %2569 = vmatpush3.bf16.msra.mxu0 %v2566_v47 }
 0x3eb   : > { %2571 = vmatprep.subr.bf16.mxu0 %v2570_v46 }
 0x3ed   : > { %2384 = vmatmul.mubr.msk.f32.vlgmr.msra.gmra.mrb[12].mxu0 %vm500_vm1, %v2985_v22  ;;  %v2014_v22 = vld [vmem:[%s3457_s3 + $0x118] sm:$0xff] }
 0x3ee   : > { %2573 = vmatpush3.bf16.msra.mxu0 %v2570_v46  ;;  %2390 = vmatprep.mubr.msk.f32.mxu0 %vm500_vm1, %v2990_v25  ;;  %v1326_v25 = vpack.c.bf16 %v2014_v22, %v2013_v50 }
 0x3ef   : > { %2393 = vmatprep.subr.bf16.mxu0 %v2726_v3 }
 0x3f5   : > { %2391 = vmatmul.mubr.msk.f32.vlgmr.msra.gmra.mrb[12].mxu0 %vm500_vm1, %v2999_v26  ;;  %v2017_v26 = vld [vmem:[%s3457_s3 + $0x130] sm:$0xff] }
 0x3f6   : > { %2394 = vmatpush3.bf16.msra.mxu0 %v1325_v49  ;;  %2409 = vmatprep.mubr.msk.bf16.mxu0 %vm2727_vm0, %v2726_v3  ;;  %v1328_v55 = vpack.c.bf16 %v2018_v54, %v2017_v26  ;;  %v1663_v26 = vld [vmem:[%s3463_s9 + $0x8] sm:$0xff]  ;;  %v1665_v54 = vld [vmem:[%s3463_s9 + $0x18] sm:$0xff] }
 0x3f7   : > { %2395 = vmatprep.subr.bf16.mxu0 %v2726_v3 }
 0x3fa   : > { %2396 = vmatpush3.bf16.msra.mxu0 %v1326_v25 }
 0x3fb   : > { %2397 = vmatprep.subr.bf16.mxu0 %v2726_v3 }
 0x3fe   : > { %2398 = vmatpush3.bf16.msra.mxu0 %v1327_v53 }
 0x3ff   : > { %2399 = vmatprep.subr.bf16.mxu0 %v2726_v3 }
 0x402   : > { %2400 = vmatpush3.bf16.msra.mxu0 %v1328_v55  ;;  %v2642_v55 = vpack.c.bf16 %v1665_v54, %v1663_v26 }
 0x403   : > { %2401 = vmatprep.subr.bf16.mxu0 %v2726_v3 }
 0x406   : > { %2402 = vmatpush3.bf16.msra.mxu0 %v1329_v58  ;;  %v2644_v58 = vpack.c.bf16 %v1664_v57, %v1662_v56 }
 0x407   : > { %2403 = vmatprep.subr.bf16.mxu0 %v2726_v3 }
 0x40a   : > { %2404 = vmatpush3.bf16.msra.mxu0 %v1330_v61  ;;  %v2646_v61 = vpack.c.bf16 %v1669_v60, %v1667_v59 }
 0x40b   : > { %2405 = vmatprep.subr.bf16.mxu0 %v2726_v3 }
 0x40e   : > { %2406 = vmatpush3.bf16.msra.mxu0 %v1331_v0  ;;  %v2648_v0 = vpack.c.bf16 %v1668_v63, %v1666_v62 }
 0x40f   : > { %2407 = vmatprep.subr.bf16.mxu0 %v2726_v3 }
 0x412   : > { %2408 = vmatpush3.bf16.msra.mxu0 %v1332_v4  ;;  %v2650_v4 = vpack.c.bf16 %v1673_v2, %v1671_v1 }
 0x415   : > { %2410 = vmatmul.mubr.bf16.vlgmr.msra.gmra.mrb[16].mxu0 %v1026_v39  ;;  %v2606_v39 = vpack.c.bf16 %v1487_v38, %v1486_v37  ;;  %v1691_v37 = vld [vmem:[%s3463_s9 + $0xe8] sm:$0xff]  ;;  %v1693_v38 = vld [vmem:[%s3463_s9 + $0xf8] sm:$0xff] }
 0x416   : > { %2417 = vmatprep.mubr.msk.f32.mxu0 %vm500_vm1, %v3004_v27  ;;  %v1473_v27 = vld [vmem:[%s3461_s7 + $0x8] sm:$0xff] }
 0x417   : > { %v2578_v14 = vpack.c.bf16 %v1473_v27, %v1472_v12  ;;  %v1674_v27 = vld [vmem:[%s3463_s9 + $0x60] sm:$0xff] }
 0x419   : > { %2579 = vmatprep.subr.bf16.mxu1 %v2578_v14 }
 0x41a   : > { %2581 = vmatpush3.bf16.msra.mxu1 %v2578_v14 }
 0x4e8   : > { %v1367_v5 = vpop.f32.mrb[16].mxu0 }
 0x4e9   : > { %v2411_v6 = vpop.f32.mrb[17].mxu0 }
 0x4ea   : > { %v1370_v7 = vpop.f32.mrb[18].mxu0  ;;  %v1672_v6 = vld [vmem:[%s3463_s9 + $0x50] sm:$0xff] }
 0x4eb   : > { %v2574_v8 = vpack.c.bf16 %v1370_v7, %v1367_v5  ;;  %v2412_v9 = vpop.f32.mrb[19].mxu0  ;;  %v1670_v5 = vld [vmem:[%s3463_s9 + $0x40] sm:$0xff] }
 0x4ec   : > { %v2652_v7 = vpack.c.bf16 %v1672_v6, %v1670_v5  ;;  %v1677_v9 = vld [vmem:[%s3463_s9 + $0x78] sm:$0xff] }
 0x4ed   : > { %2575 = vmatprep.subr.bf16.mxu0 %v2574_v8 }
 0x4ee   : > { %2577 = vmatpush3.bf16.msra.mxu0 %v2574_v8  ;;  %v1675_v8 = vld [vmem:[%s3463_s9 + $0x68] sm:$0xff] }
 0x4ef   : > { %2643 = vmatprep.subr.bf16.mxu0 %v2642_v55  ;;  %v2654_v12 = vpack.c.bf16 %v1677_v9, %v1675_v8  ;;  %v1773_v9 = vld [vmem:[%s3462_s8 + $0x10] sm:$0xff] }
 0x4f1   : > { %2418 = vmatmul.mubr.msk.f32.vlgmr.msra.gmra.mrb[12].mxu0 %vm500_vm1, %v3013_v33  ;;  %v1475_v33 = vld [vmem:[%s3461_s7 + $0x18] sm:$0xff] }
 0x4f2   : > { %1758 = vmatprep.mubr.f32.mxu0 %v2726_v3  ;;  %v2582_v16 = vpack.c.bf16 %v1475_v33, %v1474_v15  ;;  %2645 = vmatpush1.bf16.msra.mxu0 %v2644_v58  ;;  %v1679_v33 = vld [vmem:[%s3463_s9 + $0x88] sm:$0xff] }
 0x4f3   : > { %2647 = vmatprep.subr.bf16.mxu0 %v2646_v61 }
 0x4f4   : > { %2583 = vmatprep.subr.bf16.mxu1 %v2582_v16 }
 0x4f5   : > { %2585 = vmatpush3.bf16.msra.mxu1 %v2582_v16 }
 0x4f6   : > { %2587 = vmatprep.subr.bf16.mxu1 %v2586_v19  ;;  %2649 = vmatpush1.bf16.msra.mxu0 %v2648_v0 }
 0x4f7   : > { %2651 = vmatprep.subr.bf16.mxu0 %v2650_v4 }
 0x4f9   : > { %2589 = vmatpush3.bf16.msra.mxu1 %v2586_v19 }
 0x4fa   : > { %2591 = vmatprep.subr.bf16.mxu1 %v2590_v23  ;;  %2653 = vmatpush1.bf16.msra.mxu0 %v2652_v7 }
 0x4fb   : > { %2655 = vmatprep.subr.bf16.mxu0 %v2654_v12  ;;  %v1774_v12 = vld [vmem:[%s3462_s8 + $0x18] sm:$0xff] }
 0x4fd   : > { %2593 = vmatpush3.bf16.msra.mxu1 %v2590_v23 }
 0x4fe   : > { %2595 = vmatprep.subr.bf16.mxu1 %v2594_v29 }
 0x501   : > { %2597 = vmatpush3.bf16.msra.mxu1 %v2594_v29 }
 0x502   : > { %2599 = vmatprep.subr.bf16.mxu1 %v2598_v32 }
 0x505   : > { %2601 = vmatpush3.bf16.msra.mxu1 %v2598_v32 }
 0x506   : > { %2603 = vmatprep.subr.bf16.mxu1 %v2602_v36 }
 0x509   : > { %2605 = vmatpush3.bf16.msra.mxu1 %v2602_v36 }
 0x50a   : > { %2607 = vmatprep.subr.bf16.mxu1 %v2606_v39 }
 0x50d   : > { %2609 = vmatpush3.bf16.msra.mxu1 %v2606_v39 }
 0x50e   : > { %2611 = vmatprep.subr.bf16.mxu1 %v2578_v14 }
 0x5c4   : > { %v2419_v41 = vpop.f32.mrb[12].mxu0 }
 0x5c5   : > { %v1459_v42 = vadd.f32 %v2419_v41, %v2029_v40  ;;  %v1440_v43 = vpop.f32.mrb[13].mxu0  ;;  %v1690_v41 = vld [vmem:[%s3463_s9 + $0xe0] sm:$0xff] }
 0x5c6   : > { %v1458_v44 = vadd.f32 %v2029_v40, %v1440_v43  ;;  %v2670_v40 = vpack.c.bf16 %v1693_v38, %v1691_v37 }
 0x5c7   : > { %v1461_v45 = vsub.f32 0.0, %v1459_v42 }
 0x5c8   : > { %v1460_v46 = vsub.f32 0.0, %v1458_v44 }
 0x5c9   : > { %v1464_v47 = vmul.f32 1.442695, %v1461_v45 }
 0x5ca   : > { %v1462_v11 = vmul.f32 1.442695, %v1460_v46 }
 0x5cb   : > { %2708 = vpow2.f32 %v1464_v47 }
 0x5cc   : > { %2710 = vpow2.f32 %v1462_v11 }
 0x5d5   : > { %v2709_v48 = vpop.eup %2708 }
 0x5d6   : > { %v2711_v13 = vpop.eup %2710  ;;  %v1467_v10 = vadd.f32 1.0, %v2709_v48 }
 0x5d7   : > { %v1466_v49 = vadd.f32 1.0, %v2711_v13 }
 0x5d8   : > { %2712 = vrcp.f32 %v1467_v10 }
 0x5d9   : > { %2714 = vrcp.f32 %v1466_v49 }
 0x5e2   : > { %v2713_v50 = vpop.eup %2712 }
 0x5e3   : > { %v2715_v22 = vpop.eup %2714  ;;  %v3320_v51 = vmul.f32 %v2713_v50, %v1459_v42  ;;  %v1692_v42 = vld [vmem:[%s3463_s9 + $0xf0] sm:$0xff] }
 0x5e4   : > { %v3318_v25 = vmul.f32 %v2715_v22, %v1458_v44  ;;  %v2672_v43 = vpack.c.bf16 %v1692_v42, %v1690_v41 }
 0x5e5   : > { %v1571_v53 = vmul.f32 %v3320_v51, %v3320_v51 }
 0x5e6   : > { %2452 = vmatprep.mubr.f32.mxu1 %v3318_v25  ;;  %v1570_v52 = vmul.f32 %v3318_v25, %v3318_v25 }
 0x5e7   : > { %2453 = vmatmul.mubr.f32.vlgmr.msra.gmra.mrb[10].mxu1 %v3320_v51 }
 0x5e8   : > { %2613 = vmatpush3.bf16.msra.mxu1 %v2578_v14  ;;  %2487 = vmatprep.mubr.f32.mxu1 %v1570_v52  ;;  %v1676_v14 = vld [vmem:[%s3463_s9 + $0x70] sm:$0xff] }
 0x5e9   : > { %2615 = vmatprep.subr.bf16.mxu1 %v2582_v16  ;;  %v2656_v15 = vpack.c.bf16 %v1676_v14, %v1674_v27 }
 0x5eb   : > { %2657 = vmatpush1.bf16.msra.mxu0 %v2656_v15 }
 0x5ec   : > { %2617 = vmatpush3.bf16.msra.mxu1 %v2582_v16  ;;  %v1681_v16 = vld [vmem:[%s3463_s9 + $0x98] sm:$0xff] }
 0x5ed   : > { %2619 = vmatprep.subr.bf16.mxu1 %v2586_v19  ;;  %v2658_v17 = vpack.c.bf16 %v1681_v16, %v1679_v33 }
 0x5ef   : > { %2659 = vmatprep.subr.bf16.mxu0 %v2658_v17 }
 0x5f0   : > { %2621 = vmatpush3.bf16.msra.mxu1 %v2586_v19  ;;  %v1680_v19 = vld [vmem:[%s3463_s9 + $0x90] sm:$0xff] }
 0x5f1   : > { %2623 = vmatprep.subr.bf16.mxu1 %v2590_v23  ;;  %v2660_v20 = vpack.c.bf16 %v1680_v19, %v1678_v18 }
 0x5f3   : > { %2661 = vmatpush1.bf16.msra.mxu0 %v2660_v20 }
 0x5f4   : > { %2625 = vmatpush3.bf16.msra.mxu1 %v2590_v23  ;;  %v1685_v23 = vld [vmem:[%s3463_s9 + $0xb8] sm:$0xff] }
 0x5f5   : > { %2627 = vmatprep.subr.bf16.mxu1 %v2594_v29  ;;  %v2662_v24 = vpack.c.bf16 %v1685_v23, %v1683_v21 }
 0x5f7   : > { %2663 = vmatprep.subr.bf16.mxu0 %v2662_v24 }
 0x5f8   : > { %2629 = vmatpush3.bf16.msra.mxu1 %v2594_v29  ;;  %v1684_v29 = vld [vmem:[%s3463_s9 + $0xb0] sm:$0xff] }
 0x5f9   : > { %2631 = vmatprep.subr.bf16.mxu1 %v2598_v32  ;;  %v2664_v30 = vpack.c.bf16 %v1684_v29, %v1682_v28 }
 0x5fb   : > { %2665 = vmatpush1.bf16.msra.mxu0 %v2664_v30 }
 0x5fc   : > { %2633 = vmatpush3.bf16.msra.mxu1 %v2598_v32  ;;  %v1689_v32 = vld [vmem:[%s3463_s9 + $0xd8] sm:$0xff] }
 0x5fd   : > { %2635 = vmatprep.subr.bf16.mxu1 %v2602_v36  ;;  %v2666_v35 = vpack.c.bf16 %v1689_v32, %v1687_v31 }
 0x5ff   : > { %2667 = vmatprep.subr.bf16.mxu0 %v2666_v35 }
 0x600   : > { %2637 = vmatpush3.bf16.msra.mxu1 %v2602_v36  ;;  %v1688_v36 = vld [vmem:[%s3463_s9 + $0xd0] sm:$0xff] }
 0x601   : > { %2639 = vmatprep.subr.bf16.mxu1 %v2606_v39 }
 0x604   : > { %2641 = vmatpush3.bf16.msra.mxu1 %v2606_v39  ;;  %v2668_v39 = vpack.c.bf16 %v1688_v36, %v1686_v34 }
 0x606   : > { %2669 = vmatpush1.bf16.msra.mxu0 %v2668_v39 }
 0x607   : > { %2488 = vmatmul.mubr.f32.vlgmr.msra.gmra.mrb[16].mxu1 %v1571_v53  ;;  %2671 = vmatprep.subr.bf16.mxu0 %v2670_v40 }
 0x608   : > { %1857 = vmatprep.mubr.f32.mxu1 %v2726_v3 }
 0x60a   : > { %2673 = vmatpush1.bf16.msra.mxu0 %v2672_v43 }
 0x6ba   : > { %v2454_v44 = vpop.f32.mrb[10].mxu1 }
 0x6bb   : > { %v1554_v45 = vpop.f32.mrb[11].mxu1 }
 0x6bc   : > { %v1563_v46 = vadd.f32 %v2454_v44, %v1554_v45 }
 0x6be   : > { %v1564_v47 = vrot.slane %v1563_v46, 4 }
 0x6c0   : > { %v1565_v11 = vadd.f32 %v1564_v47, %v1563_v46 }
 0x6c2   : > { %v1566_v48 = vrot.slane %v1565_v11, 2 }
 0x6c4   : > { %v1567_v49 = vadd.f32 %v1566_v48, %v1565_v11 }
 0x6c6   : > { %v1568_v52 = vrot.slane %v1567_v49, 1 }
 0x6c8   : > { %v1569_v54 = vadd.f32 %v1568_v52, %v1567_v49 }
 0x6ca   : > { %v1654_v58 = vmul.f32 %v1569_v54, %v1569_v54  ;;  %v1656_v61 = vsub.f32 %v3318_v25, %v1569_v54  ;;  %v1657_v62 = vsub.f32 %v3320_v51, %v1569_v54  ;;  %v1772_v25 = vld [vmem:[%s3462_s8 + $0x8] sm:$0xff]  ;;  %v1771_v51 = vld [vmem:[%s3462_s8] sm:$0xff] }
 0x6da   : > { %v2489_v13 = vpop.f32.mrb[16].mxu1 }
 0x6db   : > { %v1638_v10 = vpop.f32.mrb[17].mxu1 }
 0x6dc   : > { %v1647_v50 = vadd.f32 %v2489_v13, %v1638_v10 }
 0x6de   : > { %v1648_v22 = vrot.slane %v1647_v50, 4 }
 0x6e0   : > { %v1649_v53 = vadd.f32 %v1648_v22, %v1647_v50 }
 0x6e2   : > { %v1650_v26 = vrot.slane %v1649_v53, 2 }
 0x6e4   : > { %v1651_v55 = vadd.f32 %v1650_v26, %v1649_v53 }
 0x6e6   : > { %v1652_v56 = vrot.slane %v1651_v55, 1 }
 0x6e8   : > { %v1653_v57 = vadd.f32 %v1652_v56, %v1651_v55 }
 0x6ea   : > { %v1655_v59 = vsub.f32 %v1653_v57, %v1654_v58 }
 0x6ec   : > { %v1658_v60 = vadd.f32 1e-05, %v1655_v59 }
 0x6ee   : > { %2716 = vrsqrt.f32 %v1658_v60 }
 0x6f8   : > { %v2717_v63 = vpop.eup %2716 }
 0x6f9   : > { %v1660_v0 = vmul.f32 %v2717_v63, %v1656_v61  ;;  %v1661_v1 = vmul.f32 %v2717_v63, %v1657_v62 }
 0x6fb   : > { %1759 = vmatmul.mubr.f32.vlgmr.msra.gmra.mrb[14].mxu0 %v1660_v0 }
 0x6fc   : > { %1764 = vmatprep.mubr.f32.mxu0 %v2726_v3 }
 0x6ff   : > { %1765 = vmatmul.mubr.f32.gmra.mrb[20].mxu0 %v1661_v1 }
 0x700   : > { %1851 = vmatprep.mubr.f32.mxu0 %v2726_v3 }
 0x7ce   : > { %v1760_v2 = vpop.f32.mrb[14].mxu0 }
 0x7cf   : > { %v1762_v4 = vpop.f32.mrb[15].mxu0 }
 0x7d2   : > { %v1766_v5 = vpop.f32.mrb[20].mxu0 }
 0x7d3   : > { %v2676_v6 = vpack.c.bf16 %v1766_v5, %v1760_v2  ;;  %v1768_v7 = vpop.f32.mrb[21].mxu0 }
 0x7d4   : > { %v2674_v8 = vpack.c.bf16 %v1768_v7, %v1762_v4 }
 0x7d6   : > { %2675 = vmatprep.subr.bf16.mxu0 %v2674_v8  ;;  %2678 = vmatprep.subr.bf16.mxu1 %v2674_v8 }
 0x7d7   : > { %2677 = vmatpush1.bf16.msra.mxu0 %v2676_v6  ;;  %2679 = vmatpush1.bf16.msra.mxu1 %v2676_v6 }
 0x7da   : > { %2031 = vmatmul.mubr.msk.f32.vlgmr.msra.gmra.mrb[18].mxu1 %vm500_vm1, %v1772_v25  ;;  %2030 = vmatmul.mubr.msk.f32.vlgmr.msra.gmra.mrb[22].mxu0 %vm500_vm1, %v1771_v51 }
 0x7db   : > { %1863 = vmatprep.mubr.f32.mxu1 %v2726_v3 }
 0x7de   : > { %2032 = vmatmul.mubr.msk.f32.gmra.mrb[20].mxu1 %vm500_vm1, %v1773_v9 }
 0x7df   : > { %1869 = vmatprep.mubr.f32.mxu1 %v2726_v3 }
 0x7e2   : > { %2033 = vmatmul.mubr.msk.f32.gmra.mrb[22].mxu1 %vm500_vm1, %v1774_v12 }
 0x8ad   : > { %v1859_v27 = vpop.f32.mrb[18].mxu1  ;;  %v1853_v14 = vpop.f32.mrb[22].mxu0 }
 0x8ae   : > { %1878 = vst [vmem:[%s359_s24 + $0x10] sm:$0xff] %v1859_v27  ;;  %v1861_v15 = vpop.f32.mrb[19].mxu1  ;;  %1876 = vst [vmem:[%s359_s24] sm:$0xff] %v1853_v14  ;;  %v1855_v33 = vpop.f32.mrb[23].mxu0 }
 0x8af   : > { %1879 = vst [vmem:[%s359_s24 + $0x18] sm:$0xff] %v1861_v15  ;;  %1877 = vst [vmem:[%s359_s24 + $0x8] sm:$0xff] %v1855_v33 }
 0x8b1   : > { %v1865_v3 = vpop.f32.mrb[20].mxu1 }
 0x8b2   : > { %1880 = vst [vmem:[%s359_s24 + $0x20] sm:$0xff] %v1865_v3  ;;  %v1867_v16 = vpop.f32.mrb[21].mxu1 }
 0x8b3   : > { %1881 = vst [vmem:[%s359_s24 + $0x28] sm:$0xff] %v1867_v16 }
 0x8b5   : > { %v1871_v17 = vpop.f32.mrb[22].mxu1 }
 0x8b6   : > { %1882 = vst [vmem:[%s359_s24 + $0x30] sm:$0xff] %v1871_v17  ;;  %v1873_v18 = vpop.f32.mrb[23].mxu1 }
 0x8b7   : > { %1883 = vst [vmem:[%s359_s24 + $0x38] sm:$0xff] %v1873_v18 }
 0x8b8 PF: > { %s20_s13 = sadd.s32 1, %s2724_s13  }
 0x8b9   : > { %p17_p4 = scmp.ge.s32.totalorder %s20_s13, 4  }
 0x8bb   :  { %19 = sbr.rel (!%p17_p4) target bundleno = 1 (0x1), region = 96 }

</bundles_post_ra>
